<compile_context>
chip_gen: v6e
topology: v6e:2x2x1
jax: 0.10.0
libtpu: 0.0.40
codegen_flags: <defaults>
</compile_context>

<pallas_src>
import jax
import jax.numpy as jnp
from jax.experimental import pallas as pl
from jax.experimental.pallas import tpu as pltpu


# ----------------------------------------------------------------------------
# Stage 1: encoder (first layer K-tiled over F) -> fused (mu|log_var) head
#          -> reparameterize -> decoder trunk (latent -> 512).
# Grid: (batch_tiles, F_tiles);  F_tiles is a reduction axis ("arbitrary").
# ----------------------------------------------------------------------------
def encode_reparam_trunk_kernel(
    x_ref, eps_ref,
    w1_ref, b1_ref, w2_ref, b2_ref, w3_ref, b3_ref,
    whead_ref, bhead_ref,
    wdi_ref, bdi_ref, wd1_ref, bd1_ref, wd2_ref, bd2_ref,
    d_ref, lat_ref,          # outputs: decoder trunk activations, latent slab
    h_acc,                   # scratch: (TB, 512) f32 accumulator
):
    f32 = jnp.float32
    bf16 = jnp.bfloat16
    k = pl.program_id(1)
    nk = pl.num_programs(1)
    L = eps_ref.shape[-1]

    @pl.when(k == 0)
    def _():
        h_acc[...] = jnp.zeros_like(h_acc)

    # K-tile of the first encoder matmul: bf16 x bf16 on the MXU, f32 acc.
    h_acc[...] += jnp.dot(x_ref[...], w1_ref[...], preferred_element_type=f32)

    @pl.when(k == nk - 1)
    def _():
        def dense(a, w_ref, b_ref, relu):
            y = jnp.dot(a.astype(bf16), w_ref[...], preferred_element_type=f32)
            y = y + b_ref[...]
            return jnp.maximum(y, 0.0) if relu else y

        # Finish encoder layer 1 (bias + ReLU); Dropout == identity (eval).
        h = jnp.maximum(h_acc[...] + b1_ref[...], 0.0)
        h = dense(h, w2_ref, b2_ref, relu=True)      # 512 -> 256, ReLU
        h = dense(h, w3_ref, b3_ref, relu=True)      # 256 -> 128, ReLU

        # Fused latent heads: one (128 -> 2L) matmul, then split.
        head = dense(h, whead_ref, bhead_ref, relu=False)   # [mu | log_var]
        mu = head[:, :L]
        log_var = head[:, L:]

        # Reparameterize: z = mu + eps * exp(0.5 * log_var)   (f32 VPU/EUP).
        std = jnp.exp(0.5 * log_var)
        z = mu + eps_ref[...] * std

        # Decoder trunk: L -> 128 -> 256 (ReLU) -> 512 (ReLU).
        d = dense(z, wdi_ref, bdi_ref, relu=False)
        d = dense(d, wd1_ref, bd1_ref, relu=True)
        d = dense(d, wd2_ref, bd2_ref, relu=True)

        d_ref[...] = d.astype(bf16)                  # bf16 hand-off to stage 2
        # Lane-dense (TB, 4L) slab: [mu | log_var | z | z]; one unmasked store.
        lat_ref[...] = jnp.concatenate([head, z, z], axis=-1)


# ----------------------------------------------------------------------------
# Stage 2: final decoder layer, N-tiled over F:  sigmoid(d @ wd3 + bd3).
# Grid: (batch_tiles, F_tiles);  both axes independent ("parallel").
# ----------------------------------------------------------------------------
def decoder_out_kernel(d_ref, wd3_ref, bd3_ref, recon_ref):
    logits = jnp.dot(d_ref[...], wd3_ref[...], preferred_element_type=jnp.float32)
    recon_ref[...] = jax.nn.sigmoid(logits + bd3_ref[...])


# ----------------------------------------------------------------------------
# Parameter construction (deterministic, mimics nn.Linear default init range).
# Weights -> bf16 (transposed vs. PyTorch: (in, out)); biases -> f32 (1, out).
# ----------------------------------------------------------------------------
def _linear_params(key, fan_in, fan_out):
    kw, kb = jax.random.split(key)
    bound = 1.0 / jnp.sqrt(jnp.float32(fan_in))
    w = jax.random.uniform(kw, (fan_in, fan_out), jnp.float32, -bound, bound)
    b = jax.random.uniform(kb, (1, fan_out), jnp.float32, -bound, bound)
    return w.astype(jnp.bfloat16), b


def init_params(key, flattened_size, latent_dim):
    keys = jax.random.split(key, 9)
    w1, b1 = _linear_params(keys[0], flattened_size, 512)     # encoder L1
    w2, b2 = _linear_params(keys[1], 512, 256)                # encoder L2
    w3, b3 = _linear_params(keys[2], 256, 128)                # encoder L3
    wmu, bmu = _linear_params(keys[3], 128, latent_dim)       # fc_mu
    wvar, bvar = _linear_params(keys[4], 128, latent_dim)     # fc_var
    wdi, bdi = _linear_params(keys[5], latent_dim, 128)       # decoder_input
    wd1, bd1 = _linear_params(keys[6], 128, 256)              # decoder L1
    wd2, bd2 = _linear_params(keys[7], 256, 512)              # decoder L2
    wd3, bd3 = _linear_params(keys[8], 512, flattened_size)   # decoder L3

    # Fuse the two latent heads into one MXU tile.
    whead = jnp.concatenate([wmu, wvar], axis=1)               # (128, 2L) bf16
    bhead = jnp.concatenate([bmu, bvar], axis=1)               # (1, 2L)  f32

    return [w1, b1, w2, b2, w3, b3,
            whead, bhead,
            wdi, bdi, wd1, bd1, wd2, bd2, wd3, bd3]            # 16 arrays


# ----------------------------------------------------------------------------
# Wrapper: batch-tiled + F-tiled grids, small weights VMEM-resident,
# lane-dense latent slab.
# ----------------------------------------------------------------------------
def _round_up(n, m):
    return ((n + m - 1) // m) * m


def _default_tile_b():
    # v6e / v7x have a 256-row MXU; v5e and older fill 128 rows.
    try:
        kind = jax.devices()[0].device_kind.lower()
    except Exception:
        return 128
    if any(tag in kind for tag in ("v2", "v3", "v4", "v5")):
        return 128
    return 256


def voxel_beta_vae_forward(x, eps, params, input_size, *, tile_b=None, tile_f=2048):
    (w1, b1, w2, b2, w3, b3, whead, bhead,
     wdi, bdi, wd1, bd1, wd2, bd2, wd3, bd3) = params

    B = x.shape[0]
    F = w1.shape[0]                      # flattened_size
    L = eps.shape[1]                     # latent_dim

    # bf16 input: half the input DMA bytes, no per-tile cast in the kernel.
    x_flat = x.reshape(B, F).astype(jnp.bfloat16)
    eps_f32 = eps.astype(jnp.float32)

    # ---- batch tiling (callers should batch to >= tile_b rows for MXU util).
    if tile_b is None:
        tile_b = _default_tile_b()
    TB = min(tile_b, _round_up(B, 8))
    Bp = _round_up(B, TB)
    if Bp != B:
        x_flat = jnp.pad(x_flat, ((0, Bp - B), (0, 0)))
        eps_f32 = jnp.pad(eps_f32, ((0, Bp - B), (0, 0)))

    # ---- F tiling: K-tiles of w1 (encoder) and N-tiles of wd3 (decoder tail).
    TF = min(tile_f, _round_up(F, 128))
    Fp = _round_up(F, TF)
    if Fp != F:
        x_flat = jnp.pad(x_flat, ((0, 0), (0, Fp - F)))        # zero K-pad
        w1 = jnp.pad(w1, ((0, Fp - F), (0, 0)))                 # zero K-pad
        wd3 = jnp.pad(wd3, ((0, 0), (0, Fp - F)))               # zero N-pad
        bd3 = jnp.pad(bd3, ((0, 0), (0, Fp - F)))

    nb = Bp // TB
    nf = Fp // TF

    row_map = lambda i, k: (i, 0)          # activations move with batch tile
    const_map = lambda i, k: (0, 0)        # small weights stay VMEM-resident

    mid_params = (w2, b2, w3, b3, whead, bhead, wdi, bdi, wd1, bd1, wd2, bd2)

    # ---- Stage 1: encoder (K-tiled) + head + reparam + decoder trunk.
    d, lat = pl.pallas_call(
        encode_reparam_trunk_kernel,
        out_shape=(
            jax.ShapeDtypeStruct((Bp, 512), jnp.bfloat16),
            jax.ShapeDtypeStruct((Bp, 4 * L), jnp.float32),
        ),
        grid=(nb, nf),
        in_specs=[
            pl.BlockSpec((TB, TF), lambda i, k: (i, k)),    # x K-tiles
            pl.BlockSpec((TB, L), row_map),                 # eps
            pl.BlockSpec((TF, 512), lambda i, k: (k, 0)),   # w1 K-tiles
            pl.BlockSpec((1, 512), const_map),              # b1
        ] + [pl.BlockSpec(p.shape, const_map) for p in mid_params],
        out_specs=(
            pl.BlockSpec((TB, 512), row_map),
            pl.BlockSpec((TB, 4 * L), row_map),
        ),
        scratch_shapes=[pltpu.VMEM((TB, 512), jnp.float32)],
        compiler_params=pltpu.CompilerParams(
            dimension_semantics=("parallel", "arbitrary"),   # reduction last
            vmem_limit_bytes=48 * 1024 * 1024,               # <= v7x headroom
        ),
    )(x_flat, eps_f32, w1, b1, *mid_params)

    # ---- Stage 2: final decoder layer (N-tiled over F) + sigmoid.
    recon_flat = pl.pallas_call(
        decoder_out_kernel,
        out_shape=jax.ShapeDtypeStruct((Bp, Fp), jnp.float32),
        grid=(nb, nf),
        in_specs=[
            pl.BlockSpec((TB, 512), lambda i, n: (i, 0)),   # trunk activations
            pl.BlockSpec((512, TF), lambda i, n: (0, n)),   # wd3 N-tiles
            pl.BlockSpec((1, TF), lambda i, n: (0, n)),     # bd3 N-tiles
        ],
        out_specs=pl.BlockSpec((TB, TF), lambda i, n: (i, n)),
        compiler_params=pltpu.CompilerParams(
            dimension_semantics=("parallel", "parallel"),
            vmem_limit_bytes=48 * 1024 * 1024,
        ),
    )(d, wd3, bd3)

    # PyTorch decode() does x.view(-1, 1, D, H, W) — replicate exactly.
    recon = recon_flat[:B, :F].reshape(-1, 1, *input_size)
    mu = lat[:B, 0:L]
    log_var = lat[:B, L:2 * L]
    z = lat[:B, 2 * L:3 * L]
    return recon, mu, log_var, z


# ----------------------------------------------------------------------------
# Pure-JAX reference (same bf16-weight / f32-accumulate dtype flow).
# ----------------------------------------------------------------------------
def reference_forward(x, eps, params, input_size):
    (w1, b1, w2, b2, w3, b3, whead, bhead,
     wdi, bdi, wd1, bd1, wd2, bd2, wd3, bd3) = params
    f32, bf16 = jnp.float32, jnp.bfloat16

    def dense(a, w, b, relu):
        y = jnp.dot(a.astype(bf16), w, preferred_element_type=f32) + b
        return jnp.maximum(y, 0.0) if relu else y

    B = x.shape[0]
    F = w1.shape[0]
    L = eps.shape[1]
    xf = x.reshape(B, F)
    h = dense(xf, w1, b1, True)
    h = dense(h, w2, b2, True)
    h = dense(h, w3, b3, True)
    head = dense(h, whead, bhead, False)
    mu, log_var = head[:, :L], head[:, L:]
    z = mu + eps * jnp.exp(0.5 * log_var)
    d = dense(z, wdi, bdi, False)
    d = dense(d, wd1, bd1, True)
    d = dense(d, wd2, bd2, True)
    recon = jax.nn.sigmoid(
        jnp.dot(d.astype(bf16), wd3, preferred_element_type=f32) + bd3)
    return recon.reshape(-1, 1, *input_size), mu, log_var, z


if __name__ == "__main__":
    # Small, module-consistent shapes: in_channels=1, input_size=[8, 8, 16]
    # -> flattened_size = 1024, latent_dim = 64, batch = 2.
    B = 2
    in_channels = 1
    input_size = (8, 8, 16)
    latent_dim = 64
    flattened_size = in_channels * input_size[0] * input_size[1] * input_size[2]

    root = jax.random.PRNGKey(0)
    k_x, k_eps, k_params = jax.random.split(root, 3)

    # Voxel occupancy-like input in [0, 1] (PyTorch layout B, C, D, H, W).
    x = jax.random.uniform(k_x, (B, in_channels, *input_size), jnp.float32)
    eps = jax.random.normal(k_eps, (B, latent_dim), jnp.float32)

    params = init_params(k_params, flattened_size, latent_dim)

    recon, mu, log_var, z = voxel_beta_vae_forward(x, eps, params, input_size)
    jax.block_until_ready((recon, mu, log_var, z))

    # Shape / range checks.
    assert recon.shape == (B, 1, *input_size)
    assert mu.shape == (B, latent_dim)
    assert log_var.shape == (B, latent_dim)
    assert z.shape == (B, latent_dim)
    assert recon.dtype == jnp.float32
    assert bool(jnp.all(jnp.isfinite(recon)))
    assert bool(jnp.all((recon >= 0.0) & (recon <= 1.0)))   # sigmoid range

    # Reparameterization consistency.
    z_chk = mu + eps * jnp.exp(0.5 * log_var)
    assert bool(jnp.allclose(z, z_chk, atol=1e-5, rtol=1e-5))

    # Full forward against the pure-JAX reference (same dtype flow).
    recon_ref, mu_ref, lv_ref, z_ref = reference_forward(x, eps, params, input_size)
    assert bool(jnp.allclose(recon, recon_ref, atol=2e-3, rtol=1e-2))
    assert bool(jnp.allclose(mu, mu_ref, atol=2e-3, rtol=1e-2))
    assert bool(jnp.allclose(log_var, lv_ref, atol=2e-3, rtol=1e-2))
    assert bool(jnp.allclose(z, z_ref, atol=2e-3, rtol=1e-2))

    print("KERNEL_OK")
</pallas_src>

<mosaic_0001>
module attributes {stable_mosaic.version = 11 : i64} {
  func.func @encode_reparam_trunk_kernel(%arg0: i32, %arg1: i32, %arg2: memref<8x1024xbf16, #tpu.memory_space<vmem>>, %arg3: memref<8x64xf32, #tpu.memory_space<vmem>>, %arg4: memref<1024x512xbf16, #tpu.memory_space<vmem>>, %arg5: memref<1x512xf32, #tpu.memory_space<vmem>>, %arg6: memref<512x256xbf16, #tpu.memory_space<vmem>>, %arg7: memref<1x256xf32, #tpu.memory_space<vmem>>, %arg8: memref<256x128xbf16, #tpu.memory_space<vmem>>, %arg9: memref<1x128xf32, #tpu.memory_space<vmem>>, %arg10: memref<128x128xbf16, #tpu.memory_space<vmem>>, %arg11: memref<1x128xf32, #tpu.memory_space<vmem>>, %arg12: memref<64x128xbf16, #tpu.memory_space<vmem>>, %arg13: memref<1x128xf32, #tpu.memory_space<vmem>>, %arg14: memref<128x256xbf16, #tpu.memory_space<vmem>>, %arg15: memref<1x256xf32, #tpu.memory_space<vmem>>, %arg16: memref<256x512xbf16, #tpu.memory_space<vmem>>, %arg17: memref<1x512xf32, #tpu.memory_space<vmem>>, %arg18: memref<8x512xbf16, #tpu.memory_space<vmem>>, %arg19: memref<8x256xf32, #tpu.memory_space<vmem>>, %arg20: memref<8x512xf32, #tpu.memory_space<vmem>>) attributes {dimension_semantics = [#tpu.dimension_semantics<parallel>, #tpu.dimension_semantics<arbitrary>], iteration_bounds = array<i64: 1, 1>, scalar_prefetch = 0 : i64, scratch_operands = 1 : i64, tpu.core_type = #tpu.core_type<tc>, window_params = [{transform_indices = @transform_0, window_bounds = array<i64: 8, 1024>}, {transform_indices = @transform_1, window_bounds = array<i64: 8, 64>}, {transform_indices = @transform_2, window_bounds = array<i64: 1024, 512>}, {pipeline_mode = #tpu.pipeline_mode<synchronous>, transform_indices = @transform_3, window_bounds = array<i64: 1, 512>}, {pipeline_mode = #tpu.pipeline_mode<synchronous>, transform_indices = @transform_4, window_bounds = array<i64: 512, 256>}, {pipeline_mode = #tpu.pipeline_mode<synchronous>, transform_indices = @transform_5, window_bounds = array<i64: 1, 256>}, {pipeline_mode = #tpu.pipeline_mode<synchronous>, transform_indices = @transform_6, window_bounds = array<i64: 256, 128>}, {pipeline_mode = #tpu.pipeline_mode<synchronous>, transform_indices = @transform_7, window_bounds = array<i64: 1, 128>}, {pipeline_mode = #tpu.pipeline_mode<synchronous>, transform_indices = @transform_8, window_bounds = array<i64: 128, 128>}, {pipeline_mode = #tpu.pipeline_mode<synchronous>, transform_indices = @transform_9, window_bounds = array<i64: 1, 128>}, {pipeline_mode = #tpu.pipeline_mode<synchronous>, transform_indices = @transform_10, window_bounds = array<i64: 64, 128>}, {pipeline_mode = #tpu.pipeline_mode<synchronous>, transform_indices = @transform_11, window_bounds = array<i64: 1, 128>}, {pipeline_mode = #tpu.pipeline_mode<synchronous>, transform_indices = @transform_12, window_bounds = array<i64: 128, 256>}, {pipeline_mode = #tpu.pipeline_mode<synchronous>, transform_indices = @transform_13, window_bounds = array<i64: 1, 256>}, {pipeline_mode = #tpu.pipeline_mode<synchronous>, transform_indices = @transform_14, window_bounds = array<i64: 256, 512>}, {pipeline_mode = #tpu.pipeline_mode<synchronous>, transform_indices = @transform_15, window_bounds = array<i64: 1, 512>}, {transform_indices = @transform_16, window_bounds = array<i64: 8, 512>}, {transform_indices = @transform_17, window_bounds = array<i64: 8, 256>}]} {
    %c0_i32 = arith.constant 0 : i32
    %0 = arith.cmpi eq, %arg1, %c0_i32 : i32
    %1 = arith.extui %0 : i1 to i32
    %c0_i32_0 = arith.constant 0 : i32
    %2 = arith.cmpi ne, %1, %c0_i32_0 : i32
    scf.if %2 {
      %cst_10 = arith.constant 0.000000e+00 : f32
      %12 = vector.broadcast %cst_10 : f32 to vector<8x512xf32>
      %c0_11 = arith.constant 0 : index
      %c0_12 = arith.constant 0 : index
      %13 = vector.load %arg20[%c0_11, %c0_12] : memref<8x512xf32, #tpu.memory_space<vmem>>, vector<8x512xf32>
      tpu.vector_store %arg20[%c0_11, %c0_12], %12 {strides = array<i32>} : memref<8x512xf32, #tpu.memory_space<vmem>>, vector<8x512xf32>,
    } else {
    }
    %c0 = arith.constant 0 : index
    %c0_1 = arith.constant 0 : index
    %3 = vector.load %arg20[%c0, %c0_1] : memref<8x512xf32, #tpu.memory_space<vmem>>, vector<8x512xf32>
    %c0_2 = arith.constant 0 : index
    %c0_3 = arith.constant 0 : index
    %4 = vector.load %arg2[%c0_2, %c0_3] : memref<8x1024xbf16, #tpu.memory_space<vmem>>, vector<8x1024xbf16>
    %c0_4 = arith.constant 0 : index
    %c0_5 = arith.constant 0 : index
    %5 = vector.load %arg4[%c0_4, %c0_5] : memref<1024x512xbf16, #tpu.memory_space<vmem>>, vector<1024x512xbf16>
    %cst = arith.constant dense<0.000000e+00> : vector<8x512xf32>
    %6 = tpu.matmul %4, %5, %cst {dimension_numbers = #tpu.dot_dimension_numbers<[1], [0], [0], [1], [0, 0, 1, 1], [], []>} : vector<8x1024xbf16>, vector<1024x512xbf16>, vector<8x512xf32> -> vector<8x512xf32>
    %7 = arith.addf %3, %6 : vector<8x512xf32>
    %c0_6 = arith.constant 0 : index
    %c0_7 = arith.constant 0 : index
    %8 = vector.load %arg20[%c0_6, %c0_7] : memref<8x512xf32, #tpu.memory_space<vmem>>, vector<8x512xf32>
    tpu.vector_store %arg20[%c0_6, %c0_7], %7 {strides = array<i32>} : memref<8x512xf32, #tpu.memory_space<vmem>>, vector<8x512xf32>,
    %c0_i32_8 = arith.constant 0 : i32
    %9 = arith.cmpi eq, %arg1, %c0_i32_8 : i32
    %10 = arith.extui %9 : i1 to i32
    %c0_i32_9 = arith.constant 0 : i32
    %11 = arith.cmpi ne, %10, %c0_i32_9 : i32
    scf.if %11 {
      %c0_10 = arith.constant 0 : index
      %c0_11 = arith.constant 0 : index
      %12 = vector.load %arg20[%c0_10, %c0_11] : memref<8x512xf32, #tpu.memory_space<vmem>>, vector<8x512xf32>
      %c0_12 = arith.constant 0 : index
      %c0_13 = arith.constant 0 : index
      %13 = vector.load %arg5[%c0_12, %c0_13] : memref<1x512xf32, #tpu.memory_space<vmem>>, vector<1x512xf32>
      %14 = vector.broadcast %13 : vector<1x512xf32> to vector<8x512xf32>
      %15 = arith.addf %12, %14 : vector<8x512xf32>
      %cst_14 = arith.constant 0.000000e+00 : f32
      %16 = vector.broadcast %cst_14 : f32 to vector<8x512xf32>
      %17 = arith.maximumf %15, %16 : vector<8x512xf32>
      %18 = arith.truncf %17 : vector<8x512xf32> to vector<8x512xbf16>
      %c0_15 = arith.constant 0 : index
      %c0_16 = arith.constant 0 : index
      %19 = vector.load %arg6[%c0_15, %c0_16] : memref<512x256xbf16, #tpu.memory_space<vmem>>, vector<512x256xbf16>
      %cst_17 = arith.constant dense<0.000000e+00> : vector<8x256xf32>
      %20 = tpu.matmul %18, %19, %cst_17 {dimension_numbers = #tpu.dot_dimension_numbers<[1], [0], [0], [1], [0, 0, 1, 1], [], []>} : vector<8x512xbf16>, vector<512x256xbf16>, vector<8x256xf32> -> vector<8x256xf32>
      %c0_18 = arith.constant 0 : index
      %c0_19 = arith.constant 0 : index
      %21 = vector.load %arg7[%c0_18, %c0_19] : memref<1x256xf32, #tpu.memory_space<vmem>>, vector<1x256xf32>
      %22 = vector.broadcast %21 : vector<1x256xf32> to vector<8x256xf32>
      %23 = arith.addf %20, %22 : vector<8x256xf32>
      %cst_20 = arith.constant 0.000000e+00 : f32
      %24 = vector.broadcast %cst_20 : f32 to vector<8x256xf32>
      %25 = arith.maximumf %23, %24 : vector<8x256xf32>
      %26 = arith.truncf %25 : vector<8x256xf32> to vector<8x256xbf16>
      %c0_21 = arith.constant 0 : index
      %c0_22 = arith.constant 0 : index
      %27 = vector.load %arg8[%c0_21, %c0_22] : memref<256x128xbf16, #tpu.memory_space<vmem>>, vector<256x128xbf16>
      %cst_23 = arith.constant dense<0.000000e+00> : vector<8x128xf32>
      %28 = tpu.matmul %26, %27, %cst_23 {dimension_numbers = #tpu.dot_dimension_numbers<[1], [0], [0], [1], [0, 0, 1, 1], [], []>} : vector<8x256xbf16>, vector<256x128xbf16>, vector<8x128xf32> -> vector<8x128xf32>
      %c0_24 = arith.constant 0 : index
      %c0_25 = arith.constant 0 : index
      %29 = vector.load %arg9[%c0_24, %c0_25] : memref<1x128xf32, #tpu.memory_space<vmem>>, vector<1x128xf32>
      %30 = vector.broadcast %29 : vector<1x128xf32> to vector<8x128xf32>
      %31 = arith.addf %28, %30 : vector<8x128xf32>
      %cst_26 = arith.constant 0.000000e+00 : f32
      %32 = vector.broadcast %cst_26 : f32 to vector<8x128xf32>
      %33 = arith.maximumf %31, %32 : vector<8x128xf32>
      %34 = arith.truncf %33 : vector<8x128xf32> to vector<8x128xbf16>
      %c0_27 = arith.constant 0 : index
      %c0_28 = arith.constant 0 : index
      %35 = vector.load %arg10[%c0_27, %c0_28] : memref<128x128xbf16, #tpu.memory_space<vmem>>, vector<128x128xbf16>
      %cst_29 = arith.constant dense<0.000000e+00> : vector<8x128xf32>
      %36 = tpu.matmul %34, %35, %cst_29 {dimension_numbers = #tpu.dot_dimension_numbers<[1], [0], [0], [1], [0, 0, 1, 1], [], []>} : vector<8x128xbf16>, vector<128x128xbf16>, vector<8x128xf32> -> vector<8x128xf32>
      %c0_30 = arith.constant 0 : index
      %c0_31 = arith.constant 0 : index
      %37 = vector.load %arg11[%c0_30, %c0_31] : memref<1x128xf32, #tpu.memory_space<vmem>>, vector<1x128xf32>
      %38 = vector.broadcast %37 : vector<1x128xf32> to vector<8x128xf32>
      %39 = arith.addf %36, %38 : vector<8x128xf32>
      %40 = vector.extract_strided_slice %39 {offsets = [0, 0], sizes = [8, 64], strides = [1, 1]} : vector<8x128xf32> to vector<8x64xf32>
      %41 = vector.extract_strided_slice %39 {offsets = [0, 64], sizes = [8, 64], strides = [1, 1]} : vector<8x128xf32> to vector<8x64xf32>
      %cst_32 = arith.constant 5.000000e-01 : f32
      %42 = vector.broadcast %cst_32 : f32 to vector<8x64xf32>
      %43 = arith.mulf %42, %41 : vector<8x64xf32>
      %44 = math.exp %43 : vector<8x64xf32>
      %c0_33 = arith.constant 0 : index
      %c0_34 = arith.constant 0 : index
      %45 = vector.load %arg3[%c0_33, %c0_34] : memref<8x64xf32, #tpu.memory_space<vmem>>, vector<8x64xf32>
      %46 = arith.mulf %45, %44 : vector<8x64xf32>
      %47 = arith.addf %40, %46 : vector<8x64xf32>
      %48 = arith.truncf %47 : vector<8x64xf32> to vector<8x64xbf16>
      %c0_35 = arith.constant 0 : index
      %c0_36 = arith.constant 0 : index
      %49 = vector.load %arg12[%c0_35, %c0_36] : memref<64x128xbf16, #tpu.memory_space<vmem>>, vector<64x128xbf16>
      %cst_37 = arith.constant dense<0.000000e+00> : vector<8x128xf32>
      %50 = tpu.matmul %48, %49, %cst_37 {dimension_numbers = #tpu.dot_dimension_numbers<[1], [0], [0], [1], [0, 0, 1, 1], [], []>} : vector<8x64xbf16>, vector<64x128xbf16>, vector<8x128xf32> -> vector<8x128xf32>
      %c0_38 = arith.constant 0 : index
      %c0_39 = arith.constant 0 : index
      %51 = vector.load %arg13[%c0_38, %c0_39] : memref<1x128xf32, #tpu.memory_space<vmem>>, vector<1x128xf32>
      %52 = vector.broadcast %51 : vector<1x128xf32> to vector<8x128xf32>
      %53 = arith.addf %50, %52 : vector<8x128xf32>
      %54 = arith.truncf %53 : vector<8x128xf32> to vector<8x128xbf16>
      %c0_40 = arith.constant 0 : index
      %c0_41 = arith.constant 0 : index
      %55 = vector.load %arg14[%c0_40, %c0_41] : memref<128x256xbf16, #tpu.memory_space<vmem>>, vector<128x256xbf16>
      %cst_42 = arith.constant dense<0.000000e+00> : vector<8x256xf32>
      %56 = tpu.matmul %54, %55, %cst_42 {dimension_numbers = #tpu.dot_dimension_numbers<[1], [0], [0], [1], [0, 0, 1, 1], [], []>} : vector<8x128xbf16>, vector<128x256xbf16>, vector<8x256xf32> -> vector<8x256xf32>
      %c0_43 = arith.constant 0 : index
      %c0_44 = arith.constant 0 : index
      %57 = vector.load %arg15[%c0_43, %c0_44] : memref<1x256xf32, #tpu.memory_space<vmem>>, vector<1x256xf32>
      %58 = vector.broadcast %57 : vector<1x256xf32> to vector<8x256xf32>
      %59 = arith.addf %56, %58 : vector<8x256xf32>
      %cst_45 = arith.constant 0.000000e+00 : f32
      %60 = vector.broadcast %cst_45 : f32 to vector<8x256xf32>
      %61 = arith.maximumf %59, %60 : vector<8x256xf32>
      %62 = arith.truncf %61 : vector<8x256xf32> to vector<8x256xbf16>
      %c0_46 = arith.constant 0 : index
      %c0_47 = arith.constant 0 : index
      %63 = vector.load %arg16[%c0_46, %c0_47] : memref<256x512xbf16, #tpu.memory_space<vmem>>, vector<256x512xbf16>
      %cst_48 = arith.constant dense<0.000000e+00> : vector<8x512xf32>
      %64 = tpu.matmul %62, %63, %cst_48 {dimension_numbers = #tpu.dot_dimension_numbers<[1], [0], [0], [1], [0, 0, 1, 1], [], []>} : vector<8x256xbf16>, vector<256x512xbf16>, vector<8x512xf32> -> vector<8x512xf32>
      %c0_49 = arith.constant 0 : index
      %c0_50 = arith.constant 0 : index
      %65 = vector.load %arg17[%c0_49, %c0_50] : memref<1x512xf32, #tpu.memory_space<vmem>>, vector<1x512xf32>
      %66 = vector.broadcast %65 : vector<1x512xf32> to vector<8x512xf32>
      %67 = arith.addf %64, %66 : vector<8x512xf32>
      %cst_51 = arith.constant 0.000000e+00 : f32
      %68 = vector.broadcast %cst_51 : f32 to vector<8x512xf32>
      %69 = arith.maximumf %67, %68 : vector<8x512xf32>
      %70 = arith.truncf %69 : vector<8x512xf32> to vector<8x512xbf16>
      %c0_52 = arith.constant 0 : index
      %c0_53 = arith.constant 0 : index
      %71 = vector.load %arg18[%c0_52, %c0_53] : memref<8x512xbf16, #tpu.memory_space<vmem>>, vector<8x512xbf16>
      tpu.vector_store %arg18[%c0_52, %c0_53], %70 {strides = array<i32>} : memref<8x512xbf16, #tpu.memory_space<vmem>>, vector<8x512xbf16>,
      %72 = tpu.concatenate %39, %47, %47 in 1 : vector<8x128xf32>, vector<8x64xf32>, vector<8x64xf32> -> vector<8x256xf32>
      %c0_54 = arith.constant 0 : index
      %c0_55 = arith.constant 0 : index
      %73 = vector.load %arg19[%c0_54, %c0_55] : memref<8x256xf32, #tpu.memory_space<vmem>>, vector<8x256xf32>
      tpu.vector_store %arg19[%c0_54, %c0_55], %72 {strides = array<i32>} : memref<8x256xf32, #tpu.memory_space<vmem>>, vector<8x256xf32>,
    } else {
    }
    return
  }
  func.func @transform_0(%arg0: i32, %arg1: i32) -> (i32, i32) {
    %c0_i32 = arith.constant 0 : i32
    return %arg0, %arg1 : i32, i32
  }
  func.func @transform_1(%arg0: i32, %arg1: i32) -> (i32, i32) {
    %c0_i32 = arith.constant 0 : i32
    %c0_i32_0 = arith.constant 0 : i32
    return %arg0, %c0_i32 : i32, i32
  }
  func.func @transform_2(%arg0: i32, %arg1: i32) -> (i32, i32) {
    %c0_i32 = arith.constant 0 : i32
    %c0_i32_0 = arith.constant 0 : i32
    return %arg1, %c0_i32 : i32, i32
  }
  func.func @transform_3(%arg0: i32, %arg1: i32) -> (i32, i32) {
    %c0_i32 = arith.constant 0 : i32
    %c0_i32_0 = arith.constant 0 : i32
    %c0_i32_1 = arith.constant 0 : i32
    return %c0_i32, %c0_i32_0 : i32, i32
  }
  func.func @transform_4(%arg0: i32, %arg1: i32) -> (i32, i32) {
    %c0_i32 = arith.constant 0 : i32
    %c0_i32_0 = arith.constant 0 : i32
    %c0_i32_1 = arith.constant 0 : i32
    return %c0_i32, %c0_i32_0 : i32, i32
  }
  func.func @transform_5(%arg0: i32, %arg1: i32) -> (i32, i32) {
    %c0_i32 = arith.constant 0 : i32
    %c0_i32_0 = arith.constant 0 : i32
    %c0_i32_1 = arith.constant 0 : i32
    return %c0_i32, %c0_i32_0 : i32, i32
  }
  func.func @transform_6(%arg0: i32, %arg1: i32) -> (i32, i32) {
    %c0_i32 = arith.constant 0 : i32
    %c0_i32_0 = arith.constant 0 : i32
    %c0_i32_1 = arith.constant 0 : i32
    return %c0_i32, %c0_i32_0 : i32, i32
  }
  func.func @transform_7(%arg0: i32, %arg1: i32) -> (i32, i32) {
    %c0_i32 = arith.constant 0 : i32
    %c0_i32_0 = arith.constant 0 : i32
    %c0_i32_1 = arith.constant 0 : i32
    return %c0_i32, %c0_i32_0 : i32, i32
  }
  func.func @transform_8(%arg0: i32, %arg1: i32) -> (i32, i32) {
    %c0_i32 = arith.constant 0 : i32
    %c0_i32_0 = arith.constant 0 : i32
    %c0_i32_1 = arith.constant 0 : i32
    return %c0_i32, %c0_i32_0 : i32, i32
  }
  func.func @transform_9(%arg0: i32, %arg1: i32) -> (i32, i32) {
    %c0_i32 = arith.constant 0 : i32
    %c0_i32_0 = arith.constant 0 : i32
    %c0_i32_1 = arith.constant 0 : i32
    return %c0_i32, %c0_i32_0 : i32, i32
  }
  func.func @transform_10(%arg0: i32, %arg1: i32) -> (i32, i32) {
    %c0_i32 = arith.constant 0 : i32
    %c0_i32_0 = arith.constant 0 : i32
    %c0_i32_1 = arith.constant 0 : i32
    return %c0_i32, %c0_i32_0 : i32, i32
  }
  func.func @transform_11(%arg0: i32, %arg1: i32) -> (i32, i32) {
    %c0_i32 = arith.constant 0 : i32
    %c0_i32_0 = arith.constant 0 : i32
    %c0_i32_1 = arith.constant 0 : i32
    return %c0_i32, %c0_i32_0 : i32, i32
  }
  func.func @transform_12(%arg0: i32, %arg1: i32) -> (i32, i32) {
    %c0_i32 = arith.constant 0 : i32
    %c0_i32_0 = arith.constant 0 : i32
    %c0_i32_1 = arith.constant 0 : i32
    return %c0_i32, %c0_i32_0 : i32, i32
  }
  func.func @transform_13(%arg0: i32, %arg1: i32) -> (i32, i32) {
    %c0_i32 = arith.constant 0 : i32
    %c0_i32_0 = arith.constant 0 : i32
    %c0_i32_1 = arith.constant 0 : i32
    return %c0_i32, %c0_i32_0 : i32, i32
  }
  func.func @transform_14(%arg0: i32, %arg1: i32) -> (i32, i32) {
    %c0_i32 = arith.constant 0 : i32
    %c0_i32_0 = arith.constant 0 : i32
    %c0_i32_1 = arith.constant 0 : i32
    return %c0_i32, %c0_i32_0 : i32, i32
  }
  func.func @transform_15(%arg0: i32, %arg1: i32) -> (i32, i32) {
    %c0_i32 = arith.constant 0 : i32
    %c0_i32_0 = arith.constant 0 : i32
    %c0_i32_1 = arith.constant 0 : i32
    return %c0_i32, %c0_i32_0 : i32, i32
  }
  func.func @transform_16(%arg0: i32, %arg1: i32) -> (i32, i32) {
    %c0_i32 = arith.constant 0 : i32
    %c0_i32_0 = arith.constant 0 : i32
    return %arg0, %c0_i32 : i32, i32
  }
  func.func @transform_17(%arg0: i32, %arg1: i32) -> (i32, i32) {
    %c0_i32 = arith.constant 0 : i32
    %c0_i32_0 = arith.constant 0 : i32
    return %arg0, %c0_i32 : i32, i32
  }
}

</mosaic_0001>

<bundles_post_ra>
// kernel: tpu_custom_call.1
= control target key start
LH: loop header
LB: loop body
LE: loop exit
PB: predicated region body
PF: predicated region fallthrough
CT: control target
= control target key end

     0   :  { %s5422_s0 = inlined_call_operand.hbm [shape: bf16[8,1024], index: 0, kind: input, shape index: {}]   ;;  %s5423_s1 = inlined_call_operand.hbm [shape: f32[8,64], index: 1, kind: input, shape index: {}]   ;;  %s5424_s2 = inlined_call_operand.hbm [shape: bf16[1024,512], index: 2, kind: input, shape index: {}]   ;;  %s5425_s3 = inlined_call_operand.vmem [shape: f32[1,512], index: 3, kind: input, shape index: {}]   ;;  %s5426_s4 = inlined_call_operand.hbm [shape: bf16[512,256], index: 4, kind: input, shape index: {}]   ;;  %s5427_s5 = inlined_call_operand.hbm [shape: f32[1,256], index: 5, kind: input, shape index: {}]   ;;  %s5428_s6 = inlined_call_operand.hbm [shape: bf16[256,128], index: 6, kind: input, shape index: {}]   ;;  %s5429_s7 = inlined_call_operand.vmem [shape: f32[1,128], index: 7, kind: input, shape index: {}]   ;;  %s5430_s8 = inlined_call_operand.hbm [shape: bf16[128,128], index: 8, kind: input, shape index: {}]   ;;  %s5431_s9 = inlined_call_operand.vmem [shape: f32[1,128], index: 9, kind: input, shape index: {}]   ;;  %s5432_s10 = inlined_call_operand.hbm [shape: bf16[64,128], index: 10, kind: input, shape index: {}]   ;;  %s5433_s11 = inlined_call_operand.vmem [shape: f32[1,128], index: 11, kind: input, shape index: {}]   ;;  %s5434_s12 = inlined_call_operand.hbm [shape: bf16[128,256], index: 12, kind: input, shape index: {}]   ;;  %s5435_s13 = inlined_call_operand.vmem [shape: f32[1,256], index: 13, kind: input, shape index: {}]   ;;  %s5436_s14 = inlined_call_operand.hbm [shape: bf16[256,512], index: 14, kind: input, shape index: {}]   ;;  %s5437_s15 = inlined_call_operand.vmem [shape: f32[1,512], index: 15, kind: input, shape index: {}]   ;;  %s5438_s16 = inlined_call_operand.hbm [shape: bf16[8,512], index: 16, kind: output, shape index: {0}]   ;;  %s5439_s17 = inlined_call_operand.hbm [shape: f32[8,256], index: 17, kind: output, shape index: {1}]  }
   0x1   :  { %5440 = sst [smem:[#allocation31_spill]] %s5422_s0 }
   0x2   :  { %5441 = sst [smem:[#allocation32_spill]] %s5423_s1 }
   0x3   :  { %23 = vsyncpa [#allocation4], 0 }
   0x4   :  { %24 = vsyncpa [#allocation7], 0 }
   0x5   :  { %25 = vsyncpa [#allocation10], 0 }
   0x6   :  { %26 = vsyncpa [#allocation13], 0 }
   0x7   :  { %27 = vsyncpa [#allocation16], 0 }
   0x8   :  { %28 = vsyncpa [#allocation19], 0 }
   0x9   :  { %29 = vsyncpa [#allocation5], 0 }
   0xa   :  { %30 = vsyncpa [#allocation22], 0  ;;  %s5141_s24 = smov [#allocation6]   ;;  %s5142_s26 = smov [#allocation9]  }
   0xb   :  { %s47_s25 = sshll.u32 %s5141_s24, 4  ;;  %s70_s27 = sshll.u32 %s5142_s26, 4  ;;  %s48_s25 = int_to_ptr.vmem [resolvable:$true] %s47_s25  ;;  %s71_s27 = int_to_ptr.vmem [resolvable:$true] %s70_s27 }
   0xc   :  { %s4893_s28 = scalar_lea.vmem %s48_s25, 128  ;;  %p4898_p1 = scmp.lt.s32.totalorder %s48_s25, %s48_s25 }
   0xd   :  { %p4894_p0 = scmp.ne.s32.totalorder %s48_s25, %s4893_s28  ;;  %p4899_p2 = scmp.lt.s32.totalorder %s4893_s28, %s4893_s28 }
   0xf   :  { %p4900_p3 = por %p4899_p2, %p4898_p1 }
  0x11   :  { %p4901_p4 = pnand %p4900_p3, %p4894_p0 }
  0x13   :  { %4904 = shalt.err (!%p4901_p4)
}
  0x14   :  { %s5442_s30 = sld [smem:[#allocation32_spill]]  ;;  %s4913_s18 = scalar_lea.vmem %s71_s27, 8192 }
  0x15   :  { %p4914_p5 = scmp.ne.s32.totalorder %s71_s27, %s4913_s18  ;;  %p4918_p6 = scmp.lt.s32.totalorder %s71_s27, %s71_s27 }
  0x16   :  { %p4919_p7 = scmp.lt.s32.totalorder %s4913_s18, %s4913_s18 }
  0x18   :  { %p4920_p8 = por %p4919_p7, %p4918_p6 }
  0x1a   :  { %50 = dma.hbm_to_vmem [thread:$0]  %s5442_s30, 128, %s48_s25, [#allocation7]  }
  0x1b   :  { %p4921_p9 = pnand %p4920_p8, %p4914_p5 }
  0x1d   :  { %4924 = shalt.err (!%p4921_p9)
}
  0x1e   :  { %s5143_s19 = smov 128   ;;  %s5144_s1 = smov 8  }
  0x1f   :  { %76 = dma.hbm_to_vmem [thread:$0]  %s5426_s4, 8192, %s71_s27, [#allocation10], %s5143_s19, %s5143_s19, %s5144_s1  }
  0x20   :  { %s5145_s22 = smov [#allocation12]  }
  0x21   :  { %s92_s23 = sshll.u32 %s5145_s22, 4  ;;  %s93_s23 = int_to_ptr.vmem [resolvable:$true] %s92_s23 }
  0x22   :  { %s4933_s24 = scalar_lea.vmem %s93_s23, 2048  ;;  %p4938_p11 = scmp.lt.s32.totalorder %s93_s23, %s93_s23 }
  0x23   :  { %p4934_p10 = scmp.ne.s32.totalorder %s93_s23, %s4933_s24  ;;  %p4939_p12 = scmp.lt.s32.totalorder %s4933_s24, %s4933_s24 }
  0x25   :  { %p4940_p13 = por %p4939_p12, %p4938_p11 }
  0x27   :  { %p4941_p0 = pnand %p4940_p13, %p4934_p10 }
  0x29   :  { %4944 = shalt.err (!%p4941_p0)
}
  0x2a   :  { %s5146_s25 = smov 64   ;;  %s5147_s26 = smov 4  }
  0x2b   :  { %98 = dma.hbm_to_vmem [thread:$0]  %s5428_s6, 2048, %s93_s23, [#allocation13], %s5146_s25, %s5146_s25, %s5147_s26  }
  0x2c   :  { %s5148_s4 = smov [#allocation15]   ;;  %s5149_s0 = smov [#allocation3]  }
  0x2d   :  { %s120_s27 = sshll.u32 %s5148_s4, 4  ;;  %s37_s30 = sshll.u32 %s5149_s0, 4  ;;  %s121_s27 = int_to_ptr.vmem [resolvable:$true] %s120_s27  ;;  %s38_s30 = int_to_ptr.vmem [resolvable:$true] %s37_s30 }
  0x2e   :  { %s4953_s18 = scalar_lea.vmem %s121_s27, 512  ;;  %p4958_p2 = scmp.lt.s32.totalorder %s121_s27, %s121_s27 }
  0x2f   :  { %p4954_p1 = scmp.ne.s32.totalorder %s121_s27, %s4953_s18  ;;  %p4959_p3 = scmp.lt.s32.totalorder %s4953_s18, %s4953_s18 }
  0x31   :  { %p4960_p4 = por %p4959_p3, %p4958_p2 }
  0x33   :  { %p4961_p5 = pnand %p4960_p4, %p4954_p1 }
  0x35   :  { %4964 = shalt.err (!%p4961_p5)
}
  0x36   :  { %126 = dma.hbm_to_vmem [thread:$0]  %s5432_s10, 512, %s121_s27, [#allocation16], %s5146_s25, %s5146_s25, %s5147_s26  }
  0x37   :  { %s4973_s6 = scalar_lea.vmem %s38_s30, 512  ;;  %p4978_p7 = scmp.lt.s32.totalorder %s38_s30, %s38_s30 }
  0x38   :  { %p4974_p6 = scmp.ne.s32.totalorder %s38_s30, %s4973_s6  ;;  %p4979_p8 = scmp.lt.s32.totalorder %s4973_s6, %s4973_s6 }
  0x3a   :  { %p4980_p9 = por %p4979_p8, %p4978_p7 }
  0x3c   :  { %p4981_p10 = pnand %p4980_p9, %p4974_p6 }
  0x3e   :  { %4984 = shalt.err (!%p4981_p10)
}
  0x3f   :  { %s5443_s24 = sld [smem:[#allocation31_spill]]  ;;  %s5150_s28 = smov [#allocation8]  }
  0x40   :  { %s56_s29 = sshll.u32 %s5150_s28, 4  ;;  %s57_s29 = int_to_ptr.vmem [resolvable:$true] %s56_s29 }
  0x41   :  { %s4993_s4 = scalar_lea.vmem %s57_s29, 32768  ;;  %p4998_p12 = scmp.lt.s32.totalorder %s57_s29, %s57_s29 }
  0x42   :  { %p4994_p11 = scmp.ne.s32.totalorder %s57_s29, %s4993_s4  ;;  %p4999_p13 = scmp.lt.s32.totalorder %s4993_s4, %s4993_s4 }
  0x44   :  { %p5000_p0 = por %p4999_p13, %p4998_p12 }
  0x45   :  { %40 = dma.hbm_to_vmem [thread:$0]  %s5443_s24, 512, %s38_s30, [#allocation4]  }
  0x46   :  { %p5001_p1 = pnand %p5000_p0, %p4994_p11 }
  0x48   :  { %5004 = shalt.err (!%p5001_p1)
}
  0x49   :  { %s5151_s10 = smov 256   ;;  %s5152_s27 = smov 16  }
  0x4a   :  { %62 = dma.hbm_to_vmem [thread:$0]  %s5424_s2, 32768, %s57_s29, [#allocation7], %s5151_s10, %s5151_s10, %s5152_s27  }
  0x4b   :  { %s5153_s30 = smov [#allocation11]   ;;  %s5154_s21 = smov [#allocation14]  }
  0x4c   :  { %s83_s20 = sshll.u32 %s5153_s30, 4  ;;  %s106_s6 = sshll.u32 %s5154_s21, 4  ;;  %s84_s20 = int_to_ptr.vmem [resolvable:$true] %s83_s20  ;;  %s107_s6 = int_to_ptr.vmem [resolvable:$true] %s106_s6 }
  0x4d   :  { %s5013_s22 = scalar_lea.vmem %s84_s20, 32  ;;  %p5018_p3 = scmp.lt.s32.totalorder %s84_s20, %s84_s20 }
  0x4e   :  { %p5014_p2 = scmp.ne.s32.totalorder %s84_s20, %s5013_s22  ;;  %p5019_p4 = scmp.lt.s32.totalorder %s5013_s22, %s5013_s22 }
  0x50   :  { %p5020_p5 = por %p5019_p4, %p5018_p3 }
  0x52   :  { %p5021_p6 = pnand %p5020_p5, %p5014_p2 }
  0x54   :  { %5024 = shalt.err (!%p5021_p6)
}
  0x55   :  { %86 = dma.hbm_to_vmem [thread:$0]  %s5427_s5, 32, %s84_s20, [#allocation10]  }
  0x56   :  { %s5033_s28 = scalar_lea.vmem %s107_s6, 1024  ;;  %p5038_p8 = scmp.lt.s32.totalorder %s107_s6, %s107_s6 }
  0x57   :  { %p5034_p7 = scmp.ne.s32.totalorder %s107_s6, %s5033_s28  ;;  %p5039_p9 = scmp.lt.s32.totalorder %s5033_s28, %s5033_s28 }
  0x59   :  { %p5040_p10 = por %p5039_p9, %p5038_p8 }
  0x5b   :  { %p5041_p11 = pnand %p5040_p10, %p5034_p7 }
  0x5d   :  { %5044 = shalt.err (!%p5041_p11)
}
  0x5e   :  { %112 = dma.hbm_to_vmem [thread:$0]  %s5430_s8, 1024, %s107_s6, [#allocation13], %s5146_s25, %s5146_s25, %s5147_s26  }
  0x5f   :  { %s5155_s4 = smov [#allocation17]   ;;  %s5156_s18 = smov [#allocation18]  }
  0x60   :  { %s134_s0 = sshll.u32 %s5155_s4, 4  ;;  %s148_s30 = sshll.u32 %s5156_s18, 4  ;;  %s135_s0 = int_to_ptr.vmem [resolvable:$true] %s134_s0  ;;  %s149_s30 = int_to_ptr.vmem [resolvable:$true] %s148_s30 }
  0x61   :  { %s5053_s5 = scalar_lea.vmem %s135_s0, 2048  ;;  %p5058_p13 = scmp.lt.s32.totalorder %s135_s0, %s135_s0 }
  0x62   :  { %p5054_p12 = scmp.ne.s32.totalorder %s135_s0, %s5053_s5  ;;  %p5059_p0 = scmp.lt.s32.totalorder %s5053_s5, %s5053_s5 }
  0x64   :  { %p5060_p1 = por %p5059_p0, %p5058_p13 }
  0x66   :  { %p5061_p2 = pnand %p5060_p1, %p5054_p12 }
  0x68   :  { %5064 = shalt.err (!%p5061_p2)
}
  0x69   :  { %140 = dma.hbm_to_vmem [thread:$0]  %s5434_s12, 2048, %s135_s0, [#allocation16], %s5143_s19, %s5143_s19, %s5144_s1  }
  0x6a   :  { %s5073_s8 = scalar_lea.vmem %s149_s30, 8192  ;;  %p5078_p4 = scmp.lt.s32.totalorder %s149_s30, %s149_s30 }
  0x6b   :  { %p5074_p3 = scmp.ne.s32.totalorder %s149_s30, %s5073_s8  ;;  %p5079_p5 = scmp.lt.s32.totalorder %s5073_s8, %s5073_s8 }
  0x6d   :  { %p5080_p6 = por %p5079_p5, %p5078_p4 }
  0x6f   :  { %p5081_p7 = pnand %p5080_p6, %p5074_p3 }
  0x71   :  { %5084 = shalt.err (!%p5081_p7)
}
  0x72   :  { %154 = dma.hbm_to_vmem [thread:$0]  %s5436_s14, 8192, %s149_s30, [#allocation19], %s5151_s10, %s5151_s10, %s5152_s27  }
  0x73   :  { %5125 = dma.done.wait [#allocation4], 512  }
  0x74   :  { %5126 = vsyncadd [#allocation4], 4294966784 }
  0x75   :  { %5127 = dma.done.wait [#allocation7], 32896  }
  0x76   :  { %5128 = vsyncadd [#allocation7], 4294934400 }
  0x77   :  { %5129 = dma.done.wait [#allocation10], 8224  }
  0x78   :  { %5130 = vsyncadd [#allocation10], 4294959072 }
  0x79   :  { %5131 = dma.done.wait [#allocation13], 3072  }
  0x7a   :  { %5132 = vsyncadd [#allocation13], 4294964224 }
  0x7b   :  { %5133 = dma.done.wait [#allocation16], 2560  }
  0x7c   :  { %5134 = vsyncadd [#allocation16], 4294964736 }
  0x7d   :  { %5135 = dma.done.wait [#allocation19], 8192  }
  0x7e   :  { %5136 = vsyncadd [#allocation19], 4294959104  ;;  %v4247_v0 = vld [vmem:[#allocation8 + $0xe4] ss:$16 sps:$4 sm:$0xff]   ;;  %v4251_v2 = vld [vmem:[#allocation8 + $0xe0] ss:$16 sps:$4 sm:$0xff]  }
  0x7f   :  { %v4249_v1 = vld [vmem:[#allocation8 + $0x2e4] ss:$16 sps:$4 sm:$0xff]   ;;  %1768 = vmatprep.subr.bf16.mxu0 %v4247_v0  ;;  %v4252_v3 = vld [vmem:[#allocation8 + $0x2e0] ss:$16 sps:$4 sm:$0xff]   ;;  %v200_v46 = vld [vmem:[#allocation3] sm:$0xff]  ;;  %vm5158_vm0 = vmmov 0  }
  0x80   :  { %1809 = vmatprep.subr.bf16.mxu1 %v4249_v1  ;;  %v4253_v4 = vld [vmem:[#allocation8 + $0xc4] ss:$16 sps:$4 sm:$0xff]   ;;  %1769 = vmatpush1.bf16.msra.mxu0 %v4251_v2  ;;  %v4257_v6 = vld [vmem:[#allocation8 + $0xc0] ss:$16 sps:$4 sm:$0xff]   ;;  %v5303_v47 = vcombine.high %v200_v46, %v200_v46  ;;  %vm2965_vm1 = vcmask 523264   ;;  %s5160_s27 = smov [#allocation21]  }
  0x81   :  { %1810 = vmatpush1.bf16.msra.mxu1 %v4252_v3  ;;  %v4255_v5 = vld [vmem:[#allocation8 + $0x2c4] ss:$16 sps:$4 sm:$0xff]   ;;  %1770 = vmatprep.subr.bf16.mxu0 %v4253_v4  ;;  %v4258_v7 = vld [vmem:[#allocation8 + $0x2c0] ss:$16 sps:$4 sm:$0xff]  }
  0x82   :  { %1811 = vmatprep.subr.bf16.mxu1 %v4255_v5  ;;  %v4259_v8 = vld [vmem:[#allocation8 + $0xa4] ss:$16 sps:$4 sm:$0xff]   ;;  %v4263_v10 = vld [vmem:[#allocation8 + $0xa0] ss:$16 sps:$4 sm:$0xff]   ;;  %1800 = vmatprep.mubr.bf16.mxu0 %v5303_v47 }
  0x83   :  { %v4261_v9 = vld [vmem:[#allocation8 + $0x2a4] ss:$16 sps:$4 sm:$0xff]   ;;  %v4264_v11 = vld [vmem:[#allocation8 + $0x2a0] ss:$16 sps:$4 sm:$0xff]  }
  0x84   :  { %1771 = vmatpush1.bf16.msra.mxu0 %v4257_v6  ;;  %v4265_v12 = vld [vmem:[#allocation8 + $0x84] ss:$16 sps:$4 sm:$0xff]   ;;  %v4269_v14 = vld [vmem:[#allocation8 + $0x80] ss:$16 sps:$4 sm:$0xff]   ;;  %v5309_v6 = vcombine.low %v200_v46, %v200_v46 }
  0x85   :  { %1812 = vmatpush1.bf16.msra.mxu1 %v4258_v7  ;;  %1772 = vmatprep.subr.bf16.mxu0 %v4259_v8  ;;  %v4267_v13 = vld [vmem:[#allocation8 + $0x284] ss:$16 sps:$4 sm:$0xff]   ;;  %v4270_v15 = vld [vmem:[#allocation8 + $0x280] ss:$16 sps:$4 sm:$0xff]  }
  0x86   :  { %1813 = vmatprep.subr.bf16.mxu1 %v4261_v9  ;;  %v4271_v16 = vld [vmem:[#allocation8 + $0x64] ss:$16 sps:$4 sm:$0xff]   ;;  %v4275_v18 = vld [vmem:[#allocation8 + $0x60] ss:$16 sps:$4 sm:$0xff]  }
  0x87   :  { %v4273_v17 = vld [vmem:[#allocation8 + $0x264] ss:$16 sps:$4 sm:$0xff]   ;;  %v4276_v19 = vld [vmem:[#allocation8 + $0x260] ss:$16 sps:$4 sm:$0xff]  }
  0x88   :  { %1773 = vmatpush1.bf16.msra.mxu0 %v4263_v10  ;;  %v4277_v20 = vld [vmem:[#allocation8 + $0x44] ss:$16 sps:$4 sm:$0xff]   ;;  %v4281_v22 = vld [vmem:[#allocation8 + $0x40] ss:$16 sps:$4 sm:$0xff]  }
  0x89   :  { %1814 = vmatpush1.bf16.msra.mxu1 %v4264_v11  ;;  %1774 = vmatprep.subr.bf16.mxu0 %v4265_v12  ;;  %v4279_v21 = vld [vmem:[#allocation8 + $0x244] ss:$16 sps:$4 sm:$0xff]   ;;  %v4282_v23 = vld [vmem:[#allocation8 + $0x240] ss:$16 sps:$4 sm:$0xff]  }
  0x8a   :  { %1815 = vmatprep.subr.bf16.mxu1 %v4267_v13  ;;  %v4283_v24 = vld [vmem:[#allocation8 + $0x24] ss:$16 sps:$4 sm:$0xff]   ;;  %v4287_v26 = vld [vmem:[#allocation8 + $0x20] ss:$16 sps:$4 sm:$0xff]  }
  0x8b   :  { %v4285_v25 = vld [vmem:[#allocation8 + $0x224] ss:$16 sps:$4 sm:$0xff]   ;;  %v4288_v27 = vld [vmem:[#allocation8 + $0x220] ss:$16 sps:$4 sm:$0xff]  }
  0x8c   :  { %1775 = vmatpush1.bf16.msra.mxu0 %v4269_v14  ;;  %v4289_v28 = vld [vmem:[#allocation8 + $0x4] ss:$16 sps:$4 sm:$0xff]   ;;  %v4293_v30 = vld [vmem:[#allocation8] ss:$16 sps:$4 sm:$0xff]  }
  0x8d   :  { %1816 = vmatpush1.bf16.msra.mxu1 %v4270_v15  ;;  %1776 = vmatprep.subr.bf16.mxu0 %v4271_v16  ;;  %v4291_v29 = vld [vmem:[#allocation8 + $0x204] ss:$16 sps:$4 sm:$0xff]   ;;  %v4294_v31 = vld [vmem:[#allocation8 + $0x200] ss:$16 sps:$4 sm:$0xff]  }
  0x8e   :  { %1817 = vmatprep.subr.bf16.mxu1 %v4273_v17  ;;  %v4295_v32 = vld [vmem:[#allocation8 + $0x1e4] ss:$16 sps:$4 sm:$0xff]   ;;  %v4299_v34 = vld [vmem:[#allocation8 + $0x1e0] ss:$16 sps:$4 sm:$0xff]  }
  0x8f   :  { %v4297_v33 = vld [vmem:[#allocation8 + $0x3e4] ss:$16 sps:$4 sm:$0xff]   ;;  %v4300_v35 = vld [vmem:[#allocation8 + $0x3e0] ss:$16 sps:$4 sm:$0xff]  }
  0x90   :  { %1777 = vmatpush1.bf16.msra.mxu0 %v4275_v18  ;;  %v4301_v36 = vld [vmem:[#allocation8 + $0x1c4] ss:$16 sps:$4 sm:$0xff]   ;;  %v4305_v38 = vld [vmem:[#allocation8 + $0x1c0] ss:$16 sps:$4 sm:$0xff]  }
  0x91   :  { %1818 = vmatpush1.bf16.msra.mxu1 %v4276_v19  ;;  %1778 = vmatprep.subr.bf16.mxu0 %v4277_v20  ;;  %v4303_v37 = vld [vmem:[#allocation8 + $0x3c4] ss:$16 sps:$4 sm:$0xff]   ;;  %v4306_v39 = vld [vmem:[#allocation8 + $0x3c0] ss:$16 sps:$4 sm:$0xff]  }
  0x92   :  { %1819 = vmatprep.subr.bf16.mxu1 %v4279_v21  ;;  %v4307_v40 = vld [vmem:[#allocation8 + $0x1a4] ss:$16 sps:$4 sm:$0xff]   ;;  %v4311_v42 = vld [vmem:[#allocation8 + $0x1a0] ss:$16 sps:$4 sm:$0xff]  }
  0x93   :  { %v4309_v41 = vld [vmem:[#allocation8 + $0x3a4] ss:$16 sps:$4 sm:$0xff]   ;;  %v4312_v43 = vld [vmem:[#allocation8 + $0x3a0] ss:$16 sps:$4 sm:$0xff]  }
  0x94   :  { %1779 = vmatpush1.bf16.msra.mxu0 %v4281_v22  ;;  %v4313_v44 = vld [vmem:[#allocation8 + $0x184] ss:$16 sps:$4 sm:$0xff]   ;;  %v4317_v49 = vld [vmem:[#allocation8 + $0x180] ss:$16 sps:$4 sm:$0xff]  }
  0x95   :  { %1820 = vmatpush1.bf16.msra.mxu1 %v4282_v23  ;;  %1780 = vmatprep.subr.bf16.mxu0 %v4283_v24  ;;  %v4315_v45 = vld [vmem:[#allocation8 + $0x384] ss:$16 sps:$4 sm:$0xff]   ;;  %v4318_v50 = vld [vmem:[#allocation8 + $0x380] ss:$16 sps:$4 sm:$0xff]  }
  0x96   :  { %1821 = vmatprep.subr.bf16.mxu1 %v4285_v25  ;;  %v201_v48 = vld [vmem:[#allocation3 + $0x8] sm:$0xff] }
  0x97   :  { %v5305_v51 = vcombine.high %v201_v48, %v201_v48  ;;  %v4319_v52 = vld [vmem:[#allocation8 + $0x164] ss:$16 sps:$4 sm:$0xff]   ;;  %v4323_v54 = vld [vmem:[#allocation8 + $0x160] ss:$16 sps:$4 sm:$0xff]   ;;  %v5311_v7 = vcombine.low %v201_v48, %v201_v48 }
  0x98   :  { %1781 = vmatpush1.bf16.msra.mxu0 %v4287_v26  ;;  %v4321_v53 = vld [vmem:[#allocation8 + $0x364] ss:$16 sps:$4 sm:$0xff]   ;;  %v4324_v55 = vld [vmem:[#allocation8 + $0x360] ss:$16 sps:$4 sm:$0xff]  }
  0x99   :  { %1822 = vmatpush1.bf16.msra.mxu1 %v4288_v27  ;;  %1782 = vmatprep.subr.bf16.mxu0 %v4289_v28  ;;  %v4325_v56 = vld [vmem:[#allocation8 + $0x144] ss:$16 sps:$4 sm:$0xff]   ;;  %v4329_v58 = vld [vmem:[#allocation8 + $0x140] ss:$16 sps:$4 sm:$0xff]  }
  0x9a   :  { %1823 = vmatprep.subr.bf16.mxu1 %v4291_v29  ;;  %1841 = vmatprep.mubr.bf16.mxu1 %v5305_v51  ;;  %v4327_v57 = vld [vmem:[#allocation8 + $0x344] ss:$16 sps:$4 sm:$0xff]   ;;  %v4330_v59 = vld [vmem:[#allocation8 + $0x340] ss:$16 sps:$4 sm:$0xff]  }
  0x9b   :  { %v4331_v60 = vld [vmem:[#allocation8 + $0x124] ss:$16 sps:$4 sm:$0xff]   ;;  %v4335_v62 = vld [vmem:[#allocation8 + $0x120] ss:$16 sps:$4 sm:$0xff]  }
  0x9c   :  { %1783 = vmatpush1.bf16.msra.mxu0 %v4293_v30  ;;  %v4333_v61 = vld [vmem:[#allocation8 + $0x324] ss:$16 sps:$4 sm:$0xff]   ;;  %v4336_v63 = vld [vmem:[#allocation8 + $0x320] ss:$16 sps:$4 sm:$0xff]  }
  0x9d   :  { %1824 = vmatpush1.bf16.msra.mxu1 %v4294_v31  ;;  %1784 = vmatprep.subr.bf16.mxu0 %v4295_v32  ;;  %v4337_v0 = vld [vmem:[#allocation8 + $0x104] ss:$16 sps:$4 sm:$0xff]   ;;  %v4341_v2 = vld [vmem:[#allocation8 + $0x100] ss:$16 sps:$4 sm:$0xff]   ;;  %v5315_v32 = vld [vmem:[#allocation3 + $0x10] sm:$0xff] }
  0x9e   :  { %1825 = vmatprep.subr.bf16.mxu1 %v4297_v33  ;;  %v4339_v1 = vld [vmem:[#allocation8 + $0x304] ss:$16 sps:$4 sm:$0xff]   ;;  %v4342_v3 = vld [vmem:[#allocation8 + $0x300] ss:$16 sps:$4 sm:$0xff]  }
  0x9f   :  { %v4349_v4 = vld [vmem:[#allocation8 + $0x4e4] ss:$16 sps:$4 sm:$0xff]   ;;  %v4347_v8 = vld [vmem:[#allocation8 + $0x4e0] ss:$16 sps:$4 sm:$0xff]  }
  0xa0   :  { %1785 = vmatpush2.bf16.msra.mxu0 %v4299_v34  ;;  %v4352_v5 = vld [vmem:[#allocation8 + $0x6e4] ss:$16 sps:$4 sm:$0xff]   ;;  %v4350_v9 = vld [vmem:[#allocation8 + $0x6e0] ss:$16 sps:$4 sm:$0xff]  }
  0xa1   :  { %1826 = vmatpush2.bf16.msra.mxu1 %v4300_v35  ;;  %1786 = vmatprep.subr.bf16.mxu0 %v4301_v36  ;;  %v4355_v10 = vld [vmem:[#allocation8 + $0x4c4] ss:$16 sps:$4 sm:$0xff]   ;;  %v4353_v12 = vld [vmem:[#allocation8 + $0x4c0] ss:$16 sps:$4 sm:$0xff]   ;;  %v5321_v36 = vcombine.high %v5315_v32, %v5315_v32 }
  0xa2   :  { %1827 = vmatprep.subr.bf16.mxu1 %v4303_v37  ;;  %v4358_v11 = vld [vmem:[#allocation8 + $0x6c4] ss:$16 sps:$4 sm:$0xff]   ;;  %v4356_v13 = vld [vmem:[#allocation8 + $0x6c0] ss:$16 sps:$4 sm:$0xff]  }
  0xa3   :  { %v4361_v14 = vld [vmem:[#allocation8 + $0x4a4] ss:$16 sps:$4 sm:$0xff]   ;;  %v4359_v16 = vld [vmem:[#allocation8 + $0x4a0] ss:$16 sps:$4 sm:$0xff]  }
  0xa4   :  { %1787 = vmatpush2.bf16.msra.mxu0 %v4305_v38  ;;  %v4364_v15 = vld [vmem:[#allocation8 + $0x6a4] ss:$16 sps:$4 sm:$0xff]   ;;  %v4362_v17 = vld [vmem:[#allocation8 + $0x6a0] ss:$16 sps:$4 sm:$0xff]  }
  0xa5   :  { %1828 = vmatpush2.bf16.msra.mxu1 %v4306_v39  ;;  %1788 = vmatprep.subr.bf16.mxu0 %v4307_v40  ;;  %v4367_v18 = vld [vmem:[#allocation8 + $0x484] ss:$16 sps:$4 sm:$0xff]   ;;  %v4365_v20 = vld [vmem:[#allocation8 + $0x480] ss:$16 sps:$4 sm:$0xff]  }
  0xa6   :  { %1829 = vmatprep.subr.bf16.mxu1 %v4309_v41  ;;  %v4370_v19 = vld [vmem:[#allocation8 + $0x684] ss:$16 sps:$4 sm:$0xff]   ;;  %v4368_v21 = vld [vmem:[#allocation8 + $0x680] ss:$16 sps:$4 sm:$0xff]  }
  0xa7   :  { %v4373_v22 = vld [vmem:[#allocation8 + $0x464] ss:$16 sps:$4 sm:$0xff]   ;;  %v4371_v24 = vld [vmem:[#allocation8 + $0x460] ss:$16 sps:$4 sm:$0xff]  }
  0xa8   :  { %1789 = vmatpush2.bf16.msra.mxu0 %v4311_v42  ;;  %v4376_v23 = vld [vmem:[#allocation8 + $0x664] ss:$16 sps:$4 sm:$0xff]   ;;  %v4374_v25 = vld [vmem:[#allocation8 + $0x660] ss:$16 sps:$4 sm:$0xff]  }
  0xa9   :  { %1830 = vmatpush2.bf16.msra.mxu1 %v4312_v43  ;;  %1790 = vmatprep.subr.bf16.mxu0 %v4313_v44  ;;  %v4379_v26 = vld [vmem:[#allocation8 + $0x444] ss:$16 sps:$4 sm:$0xff]   ;;  %v4377_v28 = vld [vmem:[#allocation8 + $0x440] ss:$16 sps:$4 sm:$0xff]  }
  0xaa   :  { %1831 = vmatprep.subr.bf16.mxu1 %v4315_v45  ;;  %v4382_v27 = vld [vmem:[#allocation8 + $0x644] ss:$16 sps:$4 sm:$0xff]   ;;  %v4380_v29 = vld [vmem:[#allocation8 + $0x640] ss:$16 sps:$4 sm:$0xff]  }
  0xab   :  { %v4385_v30 = vld [vmem:[#allocation8 + $0x424] ss:$16 sps:$4 sm:$0xff]   ;;  %v4383_v34 = vld [vmem:[#allocation8 + $0x420] ss:$16 sps:$4 sm:$0xff]  }
  0xac   :  { %1791 = vmatpush2.bf16.msra.mxu0 %v4317_v49  ;;  %v4388_v31 = vld [vmem:[#allocation8 + $0x624] ss:$16 sps:$4 sm:$0xff]   ;;  %v4386_v35 = vld [vmem:[#allocation8 + $0x620] ss:$16 sps:$4 sm:$0xff]  }
  0xad   :  { %1832 = vmatpush2.bf16.msra.mxu1 %v4318_v50  ;;  %1792 = vmatprep.subr.bf16.mxu0 %v4319_v52  ;;  %v5317_v33 = vld [vmem:[#allocation3 + $0x18] sm:$0xff] }
  0xae   :  { %1833 = vmatprep.subr.bf16.mxu1 %v4321_v53  ;;  %v5325_v37 = vcombine.high %v5317_v33, %v5317_v33  ;;  %v4391_v38 = vld [vmem:[#allocation8 + $0x404] ss:$16 sps:$4 sm:$0xff]   ;;  %v4389_v40 = vld [vmem:[#allocation8 + $0x400] ss:$16 sps:$4 sm:$0xff]  }
  0xaf   :  { %v4394_v39 = vld [vmem:[#allocation8 + $0x604] ss:$16 sps:$4 sm:$0xff]   ;;  %v4392_v41 = vld [vmem:[#allocation8 + $0x600] ss:$16 sps:$4 sm:$0xff]  }
  0xb0   :  { %1793 = vmatpush2.bf16.msra.mxu0 %v4323_v54  ;;  %v4397_v42 = vld [vmem:[#allocation8 + $0x5e4] ss:$16 sps:$4 sm:$0xff]   ;;  %v4395_v44 = vld [vmem:[#allocation8 + $0x5e0] ss:$16 sps:$4 sm:$0xff]  }
  0xb1   :  { %1834 = vmatpush2.bf16.msra.mxu1 %v4324_v55  ;;  %1794 = vmatprep.subr.bf16.mxu0 %v4325_v56  ;;  %v4400_v43 = vld [vmem:[#allocation8 + $0x7e4] ss:$16 sps:$4 sm:$0xff]   ;;  %v4398_v45 = vld [vmem:[#allocation8 + $0x7e0] ss:$16 sps:$4 sm:$0xff]  }
  0xb2   :  { %1835 = vmatprep.subr.bf16.mxu1 %v4327_v57  ;;  %v4403_v46 = vld [vmem:[#allocation8 + $0x5c4] ss:$16 sps:$4 sm:$0xff]   ;;  %v4401_v49 = vld [vmem:[#allocation8 + $0x5c0] ss:$16 sps:$4 sm:$0xff]  }
  0xb3   :  { %v4406_v48 = vld [vmem:[#allocation8 + $0x7c4] ss:$16 sps:$4 sm:$0xff]   ;;  %v4404_v50 = vld [vmem:[#allocation8 + $0x7c0] ss:$16 sps:$4 sm:$0xff]  }
  0xb4   :  { %1795 = vmatpush2.bf16.msra.mxu0 %v4329_v58  ;;  %v4409_v52 = vld [vmem:[#allocation8 + $0x5a4] ss:$16 sps:$4 sm:$0xff]   ;;  %v4407_v54 = vld [vmem:[#allocation8 + $0x5a0] ss:$16 sps:$4 sm:$0xff]  }
  0xb5   :  { %1836 = vmatpush2.bf16.msra.mxu1 %v4330_v59  ;;  %1796 = vmatprep.subr.bf16.mxu0 %v4331_v60  ;;  %v4412_v53 = vld [vmem:[#allocation8 + $0x7a4] ss:$16 sps:$4 sm:$0xff]   ;;  %v4410_v55 = vld [vmem:[#allocation8 + $0x7a0] ss:$16 sps:$4 sm:$0xff]  }
  0xb6   :  { %1837 = vmatprep.subr.bf16.mxu1 %v4333_v61  ;;  %v4415_v56 = vld [vmem:[#allocation8 + $0x584] ss:$16 sps:$4 sm:$0xff]   ;;  %v4413_v58 = vld [vmem:[#allocation8 + $0x580] ss:$16 sps:$4 sm:$0xff]  }
  0xb7   :  { %v4418_v57 = vld [vmem:[#allocation8 + $0x784] ss:$16 sps:$4 sm:$0xff]   ;;  %v4416_v59 = vld [vmem:[#allocation8 + $0x780] ss:$16 sps:$4 sm:$0xff]  }
  0xb8   :  { %1797 = vmatpush2.bf16.msra.mxu0 %v4335_v62  ;;  %v4421_v60 = vld [vmem:[#allocation8 + $0x564] ss:$16 sps:$4 sm:$0xff]   ;;  %v4419_v62 = vld [vmem:[#allocation8 + $0x560] ss:$16 sps:$4 sm:$0xff]  }
  0xb9   :  { %1838 = vmatpush2.bf16.msra.mxu1 %v4336_v63  ;;  %1798 = vmatprep.subr.bf16.mxu0 %v4337_v0  ;;  %v4424_v61 = vld [vmem:[#allocation8 + $0x764] ss:$16 sps:$4 sm:$0xff]   ;;  %v4422_v63 = vld [vmem:[#allocation8 + $0x760] ss:$16 sps:$4 sm:$0xff]  }
  0xba   :  { %1839 = vmatprep.subr.bf16.mxu1 %v4339_v1  ;;  %v4427_v0 = vld [vmem:[#allocation8 + $0x544] ss:$16 sps:$4 sm:$0xff]  }
  0xbb   :  { %v4430_v1 = vld [vmem:[#allocation8 + $0x744] ss:$16 sps:$4 sm:$0xff]  }
  0xbc   :  { %1799 = vmatpush2.bf16.msra.mxu0 %v4341_v2  ;;  %v4425_v2 = vld [vmem:[#allocation8 + $0x540] ss:$16 sps:$4 sm:$0xff]  }
  0xbd   :  { %1840 = vmatpush2.bf16.msra.mxu1 %v4342_v3  ;;  %1850 = vmatprep.subr.bf16.mxu0 %v4349_v4  ;;  %v4428_v3 = vld [vmem:[#allocation8 + $0x740] ss:$16 sps:$4 sm:$0xff]   ;;  %v4433_v4 = vld [vmem:[#allocation8 + $0x524] ss:$16 sps:$4 sm:$0xff]  }
  0xbe   :  { %1891 = vmatprep.subr.bf16.mxu1 %v4352_v5  ;;  %v4436_v5 = vld [vmem:[#allocation8 + $0x724] ss:$16 sps:$4 sm:$0xff]  }
  0xbf   :  { %1801 = vmatmul.mubr.bf16.vlgmr.msra.gmra.mxu0 %v5309_v6 }
  0xc0   :  { %1842 = vmatmul.mubr.bf16.vlgmr.msra.gmra.mxu1 %v5311_v7  ;;  %1851 = vmatpush1.bf16.msra.mxu0 %v4347_v8  ;;  %v4431_v8 = vld [vmem:[#allocation8 + $0x520] ss:$16 sps:$4 sm:$0xff]  }
  0xc1   :  { %1892 = vmatpush1.bf16.msra.mxu1 %v4350_v9  ;;  %1852 = vmatprep.subr.bf16.mxu0 %v4355_v10  ;;  %v4434_v9 = vld [vmem:[#allocation8 + $0x720] ss:$16 sps:$4 sm:$0xff]   ;;  %v4439_v10 = vld [vmem:[#allocation8 + $0x504] ss:$16 sps:$4 sm:$0xff]  }
  0xc2   :  { %1893 = vmatprep.subr.bf16.mxu1 %v4358_v11  ;;  %1882 = vmatprep.mubr.bf16.mxu0 %v5321_v36  ;;  %v4442_v11 = vld [vmem:[#allocation8 + $0x704] ss:$16 sps:$4 sm:$0xff]  }
  0xc3   :  { %1923 = vmatprep.mubr.bf16.mxu1 %v5325_v37 }
  0xc4   :  { %1853 = vmatpush1.bf16.msra.mxu0 %v4353_v12  ;;  %v4437_v12 = vld [vmem:[#allocation8 + $0x500] ss:$16 sps:$4 sm:$0xff]  }
  0xc5   :  { %1894 = vmatpush1.bf16.msra.mxu1 %v4356_v13  ;;  %1854 = vmatprep.subr.bf16.mxu0 %v4361_v14  ;;  %v4440_v13 = vld [vmem:[#allocation8 + $0x700] ss:$16 sps:$4 sm:$0xff]   ;;  %v4449_v14 = vld [vmem:[#allocation8 + $0xec] ss:$16 sps:$4 sm:$0xff]  }
  0xc6   :  { %1895 = vmatprep.subr.bf16.mxu1 %v4364_v15  ;;  %v4452_v15 = vld [vmem:[#allocation8 + $0x2ec] ss:$16 sps:$4 sm:$0xff]  }
  0xc8   :  { %1855 = vmatpush1.bf16.msra.mxu0 %v4359_v16  ;;  %v5331_v16 = vcombine.low %v5315_v32, %v5315_v32  ;;  %v4473_v32 = vld [vmem:[#allocation8 + $0x6c] ss:$16 sps:$4 sm:$0xff]  }
  0xc9   :  { %1896 = vmatpush1.bf16.msra.mxu1 %v4362_v17  ;;  %1856 = vmatprep.subr.bf16.mxu0 %v4367_v18  ;;  %v5335_v17 = vcombine.low %v5317_v33, %v5317_v33  ;;  %v4447_v18 = vld [vmem:[#allocation8 + $0xe8] ss:$16 sps:$4 sm:$0xff]   ;;  %v4476_v33 = vld [vmem:[#allocation8 + $0x26c] ss:$16 sps:$4 sm:$0xff]  }
  0xca   :  { %1897 = vmatprep.subr.bf16.mxu1 %v4370_v19  ;;  %v4450_v19 = vld [vmem:[#allocation8 + $0x2e8] ss:$16 sps:$4 sm:$0xff]  }
  0xcc   :  { %1857 = vmatpush1.bf16.msra.mxu0 %v4365_v20  ;;  %v4455_v20 = vld [vmem:[#allocation8 + $0xcc] ss:$16 sps:$4 sm:$0xff]  }
  0xcd   :  { %1898 = vmatpush1.bf16.msra.mxu1 %v4368_v21  ;;  %1858 = vmatprep.subr.bf16.mxu0 %v4373_v22  ;;  %v4458_v21 = vld [vmem:[#allocation8 + $0x2cc] ss:$16 sps:$4 sm:$0xff]   ;;  %v4453_v22 = vld [vmem:[#allocation8 + $0xc8] ss:$16 sps:$4 sm:$0xff]  }
  0xce   :  { %1899 = vmatprep.subr.bf16.mxu1 %v4376_v23  ;;  %v4456_v23 = vld [vmem:[#allocation8 + $0x2c8] ss:$16 sps:$4 sm:$0xff]  }
  0xd0   :  { %1859 = vmatpush1.bf16.msra.mxu0 %v4371_v24  ;;  %v4461_v24 = vld [vmem:[#allocation8 + $0xac] ss:$16 sps:$4 sm:$0xff]  }
  0xd1   :  { %1900 = vmatpush1.bf16.msra.mxu1 %v4374_v25  ;;  %1860 = vmatprep.subr.bf16.mxu0 %v4379_v26  ;;  %v4464_v25 = vld [vmem:[#allocation8 + $0x2ac] ss:$16 sps:$4 sm:$0xff]   ;;  %v4459_v26 = vld [vmem:[#allocation8 + $0xa8] ss:$16 sps:$4 sm:$0xff]  }
  0xd2   :  { %1901 = vmatprep.subr.bf16.mxu1 %v4382_v27  ;;  %v4462_v27 = vld [vmem:[#allocation8 + $0x2a8] ss:$16 sps:$4 sm:$0xff]  }
  0xd4   :  { %1861 = vmatpush1.bf16.msra.mxu0 %v4377_v28  ;;  %v4467_v28 = vld [vmem:[#allocation8 + $0x8c] ss:$16 sps:$4 sm:$0xff]  }
  0xd5   :  { %1902 = vmatpush1.bf16.msra.mxu1 %v4380_v29  ;;  %1862 = vmatprep.subr.bf16.mxu0 %v4385_v30  ;;  %v4470_v29 = vld [vmem:[#allocation8 + $0x28c] ss:$16 sps:$4 sm:$0xff]   ;;  %v4465_v30 = vld [vmem:[#allocation8 + $0x88] ss:$16 sps:$4 sm:$0xff]  }
  0xd6   :  { %1903 = vmatprep.subr.bf16.mxu1 %v4388_v31  ;;  %v4468_v31 = vld [vmem:[#allocation8 + $0x288] ss:$16 sps:$4 sm:$0xff]  }
  0xd8   :  { %1863 = vmatpush1.bf16.msra.mxu0 %v4383_v34  ;;  %v4471_v34 = vld [vmem:[#allocation8 + $0x68] ss:$16 sps:$4 sm:$0xff]  }
  0xd9   :  { %1904 = vmatpush1.bf16.msra.mxu1 %v4386_v35  ;;  %1864 = vmatprep.subr.bf16.mxu0 %v4391_v38  ;;  %v4482_v35 = vld [vmem:[#allocation8 + $0x24c] ss:$16 sps:$4 sm:$0xff]   ;;  %v4477_v38 = vld [vmem:[#allocation8 + $0x48] ss:$16 sps:$4 sm:$0xff]  }
  0xda   :  { %1905 = vmatprep.subr.bf16.mxu1 %v4394_v39  ;;  %v4480_v39 = vld [vmem:[#allocation8 + $0x248] ss:$16 sps:$4 sm:$0xff]  }
  0xdc   :  { %1865 = vmatpush1.bf16.msra.mxu0 %v4389_v40  ;;  %v4485_v40 = vld [vmem:[#allocation8 + $0x2c] ss:$16 sps:$4 sm:$0xff]  }
  0xdd   :  { %1906 = vmatpush1.bf16.msra.mxu1 %v4392_v41  ;;  %1866 = vmatprep.subr.bf16.mxu0 %v4397_v42  ;;  %v4488_v41 = vld [vmem:[#allocation8 + $0x22c] ss:$16 sps:$4 sm:$0xff]   ;;  %v4483_v42 = vld [vmem:[#allocation8 + $0x28] ss:$16 sps:$4 sm:$0xff]  }
  0xde   :  { %1907 = vmatprep.subr.bf16.mxu1 %v4400_v43  ;;  %v4486_v43 = vld [vmem:[#allocation8 + $0x228] ss:$16 sps:$4 sm:$0xff]  }
  0xe0   :  { %1867 = vmatpush2.bf16.msra.mxu0 %v4395_v44  ;;  %v4491_v44 = vld [vmem:[#allocation8 + $0xc] ss:$16 sps:$4 sm:$0xff]  }
  0xe1   :  { %1908 = vmatpush2.bf16.msra.mxu1 %v4398_v45  ;;  %1868 = vmatprep.subr.bf16.mxu0 %v4403_v46  ;;  %v4494_v45 = vld [vmem:[#allocation8 + $0x20c] ss:$16 sps:$4 sm:$0xff]   ;;  %v4489_v46 = vld [vmem:[#allocation8 + $0x8] ss:$16 sps:$4 sm:$0xff]  }
  0xe2   :  { %1909 = vmatprep.subr.bf16.mxu1 %v4406_v48  ;;  %v4492_v48 = vld [vmem:[#allocation8 + $0x208] ss:$16 sps:$4 sm:$0xff]  }
  0xe4   :  { %1869 = vmatpush2.bf16.msra.mxu0 %v4401_v49  ;;  %v4497_v49 = vld [vmem:[#allocation8 + $0x1ec] ss:$16 sps:$4 sm:$0xff]  }
  0xe5   :  { %1910 = vmatpush2.bf16.msra.mxu1 %v4404_v50  ;;  %1870 = vmatprep.subr.bf16.mxu0 %v4409_v52  ;;  %v4500_v50 = vld [vmem:[#allocation8 + $0x3ec] ss:$16 sps:$4 sm:$0xff]   ;;  %v4495_v52 = vld [vmem:[#allocation8 + $0x1e8] ss:$16 sps:$4 sm:$0xff]  }
  0xe6   :  { %1911 = vmatprep.subr.bf16.mxu1 %v4412_v53  ;;  %v4498_v53 = vld [vmem:[#allocation8 + $0x3e8] ss:$16 sps:$4 sm:$0xff]  }
  0xe8   :  { %1871 = vmatpush2.bf16.msra.mxu0 %v4407_v54  ;;  %v4503_v54 = vld [vmem:[#allocation8 + $0x1cc] ss:$16 sps:$4 sm:$0xff]  }
  0xe9   :  { %1912 = vmatpush2.bf16.msra.mxu1 %v4410_v55  ;;  %1872 = vmatprep.subr.bf16.mxu0 %v4415_v56  ;;  %v4506_v55 = vld [vmem:[#allocation8 + $0x3cc] ss:$16 sps:$4 sm:$0xff]   ;;  %v4501_v56 = vld [vmem:[#allocation8 + $0x1c8] ss:$16 sps:$4 sm:$0xff]  }
  0xea   :  { %1913 = vmatprep.subr.bf16.mxu1 %v4418_v57  ;;  %v4504_v57 = vld [vmem:[#allocation8 + $0x3c8] ss:$16 sps:$4 sm:$0xff]  }
  0xec   :  { %1873 = vmatpush2.bf16.msra.mxu0 %v4413_v58  ;;  %v4509_v58 = vld [vmem:[#allocation8 + $0x1ac] ss:$16 sps:$4 sm:$0xff]  }
  0xed   :  { %1914 = vmatpush2.bf16.msra.mxu1 %v4416_v59  ;;  %1874 = vmatprep.subr.bf16.mxu0 %v4421_v60  ;;  %v4512_v59 = vld [vmem:[#allocation8 + $0x3ac] ss:$16 sps:$4 sm:$0xff]   ;;  %v4507_v60 = vld [vmem:[#allocation8 + $0x1a8] ss:$16 sps:$4 sm:$0xff]  }
  0xee   :  { %1915 = vmatprep.subr.bf16.mxu1 %v4424_v61  ;;  %v4510_v61 = vld [vmem:[#allocation8 + $0x3a8] ss:$16 sps:$4 sm:$0xff]  }
  0xf0   :  { %1875 = vmatpush2.bf16.msra.mxu0 %v4419_v62  ;;  %v4515_v62 = vld [vmem:[#allocation8 + $0x18c] ss:$16 sps:$4 sm:$0xff]  }
  0xf1   :  { %1916 = vmatpush2.bf16.msra.mxu1 %v4422_v63  ;;  %1876 = vmatprep.subr.bf16.mxu0 %v4427_v0  ;;  %v4518_v63 = vld [vmem:[#allocation8 + $0x38c] ss:$16 sps:$4 sm:$0xff]   ;;  %v4513_v0 = vld [vmem:[#allocation8 + $0x188] ss:$16 sps:$4 sm:$0xff]  }
  0xf2   :  { %1917 = vmatprep.subr.bf16.mxu1 %v4430_v1  ;;  %v4516_v1 = vld [vmem:[#allocation8 + $0x388] ss:$16 sps:$4 sm:$0xff]  }
  0xf4   :  { %1877 = vmatpush2.bf16.msra.mxu0 %v4425_v2  ;;  %v4521_v2 = vld [vmem:[#allocation8 + $0x16c] ss:$16 sps:$4 sm:$0xff]  }
  0xf5   :  { %1918 = vmatpush2.bf16.msra.mxu1 %v4428_v3  ;;  %1878 = vmatprep.subr.bf16.mxu0 %v4433_v4  ;;  %v4524_v3 = vld [vmem:[#allocation8 + $0x36c] ss:$16 sps:$4 sm:$0xff]   ;;  %v4519_v4 = vld [vmem:[#allocation8 + $0x168] ss:$16 sps:$4 sm:$0xff]  }
  0xf6   :  { %1919 = vmatprep.subr.bf16.mxu1 %v4436_v5  ;;  %v4522_v5 = vld [vmem:[#allocation8 + $0x368] ss:$16 sps:$4 sm:$0xff]  }
  0xf8   :  { %1879 = vmatpush2.bf16.msra.mxu0 %v4431_v8  ;;  %v4527_v8 = vld [vmem:[#allocation8 + $0x14c] ss:$16 sps:$4 sm:$0xff]  }
  0xf9   :  { %1920 = vmatpush2.bf16.msra.mxu1 %v4434_v9  ;;  %1880 = vmatprep.subr.bf16.mxu0 %v4439_v10  ;;  %v4530_v9 = vld [vmem:[#allocation8 + $0x34c] ss:$16 sps:$4 sm:$0xff]   ;;  %v4525_v10 = vld [vmem:[#allocation8 + $0x148] ss:$16 sps:$4 sm:$0xff]  }
  0xfa   :  { %1921 = vmatprep.subr.bf16.mxu1 %v4442_v11  ;;  %v4528_v11 = vld [vmem:[#allocation8 + $0x348] ss:$16 sps:$4 sm:$0xff]  }
  0xfc   :  { %1881 = vmatpush2.bf16.msra.mxu0 %v4437_v12  ;;  %v4533_v12 = vld [vmem:[#allocation8 + $0x12c] ss:$16 sps:$4 sm:$0xff]  }
  0xfd   :  { %1922 = vmatpush2.bf16.msra.mxu1 %v4440_v13  ;;  %1932 = vmatprep.subr.bf16.mxu0 %v4449_v14  ;;  %v4536_v13 = vld [vmem:[#allocation8 + $0x32c] ss:$16 sps:$4 sm:$0xff]   ;;  %v4531_v14 = vld [vmem:[#allocation8 + $0x128] ss:$16 sps:$4 sm:$0xff]  }
  0xfe   :  { %1973 = vmatprep.subr.bf16.mxu1 %v4452_v15  ;;  %v4534_v15 = vld [vmem:[#allocation8 + $0x328] ss:$16 sps:$4 sm:$0xff]  }
  0xff   :  { %1883 = vmatmul.mubr.bf16.vlgmr.msra.gmra.mxu0 %v5331_v16 }
 0x100   :  { %1924 = vmatmul.mubr.bf16.vlgmr.msra.gmra.mxu1 %v5335_v17  ;;  %1933 = vmatpush1.bf16.msra.mxu0 %v4447_v18  ;;  %v4539_v18 = vld [vmem:[#allocation8 + $0x10c] ss:$16 sps:$4 sm:$0xff]  }
 0x101   :  { %1974 = vmatpush1.bf16.msra.mxu1 %v4450_v19  ;;  %1934 = vmatprep.subr.bf16.mxu0 %v4455_v20  ;;  %v4542_v19 = vld [vmem:[#allocation8 + $0x30c] ss:$16 sps:$4 sm:$0xff]   ;;  %v4537_v20 = vld [vmem:[#allocation8 + $0x108] ss:$16 sps:$4 sm:$0xff]  }
 0x102   :  { %1975 = vmatprep.subr.bf16.mxu1 %v4458_v21  ;;  %1964 = vmatprep.mubr.bf16.mxu0 %v5303_v47  ;;  %v4474_v47 = vld [vmem:[#allocation8 + $0x268] ss:$16 sps:$4 sm:$0xff]  }
 0x103   :  { %2005 = vmatprep.mubr.bf16.mxu1 %v5305_v51  ;;  %v4479_v51 = vld [vmem:[#allocation8 + $0x4c] ss:$16 sps:$4 sm:$0xff]   ;;  %v4540_v21 = vld [vmem:[#allocation8 + $0x308] ss:$16 sps:$4 sm:$0xff]  }
 0x104   :  { %1935 = vmatpush1.bf16.msra.mxu0 %v4453_v22  ;;  %v4545_v22 = vld [vmem:[#allocation8 + $0x4ec] ss:$16 sps:$4 sm:$0xff]  }
 0x105   :  { %1976 = vmatpush1.bf16.msra.mxu1 %v4456_v23  ;;  %1936 = vmatprep.subr.bf16.mxu0 %v4461_v24  ;;  %v4548_v23 = vld [vmem:[#allocation8 + $0x6ec] ss:$16 sps:$4 sm:$0xff]   ;;  %v4543_v24 = vld [vmem:[#allocation8 + $0x4e8] ss:$16 sps:$4 sm:$0xff]  }
 0x106   :  { %1977 = vmatprep.subr.bf16.mxu1 %v4464_v25  ;;  %v4546_v25 = vld [vmem:[#allocation8 + $0x6e8] ss:$16 sps:$4 sm:$0xff]  }
 0x108   :  { %1937 = vmatpush1.bf16.msra.mxu0 %v4459_v26  ;;  %v4551_v26 = vld [vmem:[#allocation8 + $0x4cc] ss:$16 sps:$4 sm:$0xff]  }
 0x109   :  { %1978 = vmatpush1.bf16.msra.mxu1 %v4462_v27  ;;  %1938 = vmatprep.subr.bf16.mxu0 %v4467_v28  ;;  %v4554_v27 = vld [vmem:[#allocation8 + $0x6cc] ss:$16 sps:$4 sm:$0xff]   ;;  %v4549_v28 = vld [vmem:[#allocation8 + $0x4c8] ss:$16 sps:$4 sm:$0xff]  }
 0x10a   :  { %1979 = vmatprep.subr.bf16.mxu1 %v4470_v29  ;;  %v4552_v29 = vld [vmem:[#allocation8 + $0x6c8] ss:$16 sps:$4 sm:$0xff]  }
 0x10c   :  { %1939 = vmatpush1.bf16.msra.mxu0 %v4465_v30  ;;  %v4557_v30 = vld [vmem:[#allocation8 + $0x4ac] ss:$16 sps:$4 sm:$0xff]  }
 0x10d   :  { %1980 = vmatpush1.bf16.msra.mxu1 %v4468_v31  ;;  %1940 = vmatprep.subr.bf16.mxu0 %v4473_v32  ;;  %v4560_v31 = vld [vmem:[#allocation8 + $0x6ac] ss:$16 sps:$4 sm:$0xff]   ;;  %v4555_v32 = vld [vmem:[#allocation8 + $0x4a8] ss:$16 sps:$4 sm:$0xff]  }
 0x10e   :  { %1981 = vmatprep.subr.bf16.mxu1 %v4476_v33  ;;  %v4558_v33 = vld [vmem:[#allocation8 + $0x6a8] ss:$16 sps:$4 sm:$0xff]  }
 0x110   :  { %1941 = vmatpush1.bf16.msra.mxu0 %v4471_v34  ;;  %v4563_v34 = vld [vmem:[#allocation8 + $0x48c] ss:$16 sps:$4 sm:$0xff]  }
 0x111   :  { %1982 = vmatpush1.bf16.msra.mxu1 %v4474_v47  ;;  %1942 = vmatprep.subr.bf16.mxu0 %v4479_v51  ;;  %v4566_v47 = vld [vmem:[#allocation8 + $0x68c] ss:$16 sps:$4 sm:$0xff]  }
 0x112   :  { %1983 = vmatprep.subr.bf16.mxu1 %v4482_v35  ;;  %v4569_v51 = vld [vmem:[#allocation8 + $0x46c] ss:$16 sps:$4 sm:$0xff]  }
 0x113   :  { %v4572_v35 = vld [vmem:[#allocation8 + $0x66c] ss:$16 sps:$4 sm:$0xff]  }
 0x114   :  { %1943 = vmatpush1.bf16.msra.mxu0 %v4477_v38  ;;  %v4567_v38 = vld [vmem:[#allocation8 + $0x468] ss:$16 sps:$4 sm:$0xff]  }
 0x115   :  { %1984 = vmatpush1.bf16.msra.mxu1 %v4480_v39  ;;  %1944 = vmatprep.subr.bf16.mxu0 %v4485_v40  ;;  %v4570_v39 = vld [vmem:[#allocation8 + $0x668] ss:$16 sps:$4 sm:$0xff]   ;;  %v4575_v40 = vld [vmem:[#allocation8 + $0x44c] ss:$16 sps:$4 sm:$0xff]  }
 0x116   :  { %1985 = vmatprep.subr.bf16.mxu1 %v4488_v41  ;;  %v4576_v41 = vld [vmem:[#allocation8 + $0x648] ss:$16 sps:$4 sm:$0xff]  }
 0x118   :  { %1945 = vmatpush1.bf16.msra.mxu0 %v4483_v42  ;;  %v4581_v42 = vld [vmem:[#allocation8 + $0x42c] ss:$16 sps:$4 sm:$0xff]  }
 0x119   :  { %1986 = vmatpush1.bf16.msra.mxu1 %v4486_v43  ;;  %1946 = vmatprep.subr.bf16.mxu0 %v4491_v44  ;;  %v4584_v43 = vld [vmem:[#allocation8 + $0x62c] ss:$16 sps:$4 sm:$0xff]   ;;  %v4579_v44 = vld [vmem:[#allocation8 + $0x428] ss:$16 sps:$4 sm:$0xff]  }
 0x11a   :  { %1987 = vmatprep.subr.bf16.mxu1 %v4494_v45  ;;  %v4582_v45 = vld [vmem:[#allocation8 + $0x628] ss:$16 sps:$4 sm:$0xff]  }
 0x11c   :  { %1947 = vmatpush1.bf16.msra.mxu0 %v4489_v46  ;;  %v4587_v46 = vld [vmem:[#allocation8 + $0x40c] ss:$16 sps:$4 sm:$0xff]  }
 0x11d   :  { %1988 = vmatpush1.bf16.msra.mxu1 %v4492_v48  ;;  %1948 = vmatprep.subr.bf16.mxu0 %v4497_v49  ;;  %v4590_v48 = vld [vmem:[#allocation8 + $0x60c] ss:$16 sps:$4 sm:$0xff]   ;;  %v4585_v49 = vld [vmem:[#allocation8 + $0x408] ss:$16 sps:$4 sm:$0xff]  }
 0x11e   :  { %1989 = vmatprep.subr.bf16.mxu1 %v4500_v50  ;;  %v4588_v50 = vld [vmem:[#allocation8 + $0x608] ss:$16 sps:$4 sm:$0xff]  }
 0x120   :  { %1949 = vmatpush2.bf16.msra.mxu0 %v4495_v52  ;;  %v4593_v52 = vld [vmem:[#allocation8 + $0x5ec] ss:$16 sps:$4 sm:$0xff]  }
 0x121   :  { %1990 = vmatpush2.bf16.msra.mxu1 %v4498_v53  ;;  %1950 = vmatprep.subr.bf16.mxu0 %v4503_v54  ;;  %v4596_v53 = vld [vmem:[#allocation8 + $0x7ec] ss:$16 sps:$4 sm:$0xff]   ;;  %v4591_v54 = vld [vmem:[#allocation8 + $0x5e8] ss:$16 sps:$4 sm:$0xff]  }
 0x122   :  { %1991 = vmatprep.subr.bf16.mxu1 %v4506_v55  ;;  %v4594_v55 = vld [vmem:[#allocation8 + $0x7e8] ss:$16 sps:$4 sm:$0xff]  }
 0x124   :  { %1951 = vmatpush2.bf16.msra.mxu0 %v4501_v56  ;;  %v4599_v56 = vld [vmem:[#allocation8 + $0x5cc] ss:$16 sps:$4 sm:$0xff]  }
 0x125   :  { %1992 = vmatpush2.bf16.msra.mxu1 %v4504_v57  ;;  %1952 = vmatprep.subr.bf16.mxu0 %v4509_v58  ;;  %v4602_v57 = vld [vmem:[#allocation8 + $0x7cc] ss:$16 sps:$4 sm:$0xff]   ;;  %v4597_v58 = vld [vmem:[#allocation8 + $0x5c8] ss:$16 sps:$4 sm:$0xff]  }
 0x126   :  { %1993 = vmatprep.subr.bf16.mxu1 %v4512_v59  ;;  %v4600_v59 = vld [vmem:[#allocation8 + $0x7c8] ss:$16 sps:$4 sm:$0xff]  }
 0x128   :  { %1953 = vmatpush2.bf16.msra.mxu0 %v4507_v60  ;;  %v4605_v60 = vld [vmem:[#allocation8 + $0x5ac] ss:$16 sps:$4 sm:$0xff]  }
 0x129   :  { %1994 = vmatpush2.bf16.msra.mxu1 %v4510_v61  ;;  %1954 = vmatprep.subr.bf16.mxu0 %v4515_v62  ;;  %v4608_v61 = vld [vmem:[#allocation8 + $0x7ac] ss:$16 sps:$4 sm:$0xff]   ;;  %v4603_v62 = vld [vmem:[#allocation8 + $0x5a8] ss:$16 sps:$4 sm:$0xff]  }
 0x12a   :  { %1995 = vmatprep.subr.bf16.mxu1 %v4518_v63  ;;  %v4606_v63 = vld [vmem:[#allocation8 + $0x7a8] ss:$16 sps:$4 sm:$0xff]  }
 0x12c   :  { %1955 = vmatpush2.bf16.msra.mxu0 %v4513_v0  ;;  %v4611_v0 = vld [vmem:[#allocation8 + $0x58c] ss:$16 sps:$4 sm:$0xff]  }
 0x12d   :  { %1996 = vmatpush2.bf16.msra.mxu1 %v4516_v1  ;;  %1956 = vmatprep.subr.bf16.mxu0 %v4521_v2  ;;  %v4614_v1 = vld [vmem:[#allocation8 + $0x78c] ss:$16 sps:$4 sm:$0xff]   ;;  %v4609_v2 = vld [vmem:[#allocation8 + $0x588] ss:$16 sps:$4 sm:$0xff]  }
 0x12e   :  { %1997 = vmatprep.subr.bf16.mxu1 %v4524_v3  ;;  %v4612_v3 = vld [vmem:[#allocation8 + $0x788] ss:$16 sps:$4 sm:$0xff]  }
 0x130   :  { %1957 = vmatpush2.bf16.msra.mxu0 %v4519_v4  ;;  %v4617_v4 = vld [vmem:[#allocation8 + $0x56c] ss:$16 sps:$4 sm:$0xff]  }
 0x131   :  { %1998 = vmatpush2.bf16.msra.mxu1 %v4522_v5  ;;  %1958 = vmatprep.subr.bf16.mxu0 %v4527_v8  ;;  %v4620_v5 = vld [vmem:[#allocation8 + $0x76c] ss:$16 sps:$4 sm:$0xff]   ;;  %v4615_v8 = vld [vmem:[#allocation8 + $0x568] ss:$16 sps:$4 sm:$0xff]  }
 0x132   :  { %1999 = vmatprep.subr.bf16.mxu1 %v4530_v9  ;;  %v4618_v9 = vld [vmem:[#allocation8 + $0x768] ss:$16 sps:$4 sm:$0xff]  }
 0x134   :  { %1959 = vmatpush2.bf16.msra.mxu0 %v4525_v10  ;;  %v4623_v10 = vld [vmem:[#allocation8 + $0x54c] ss:$16 sps:$4 sm:$0xff]  }
 0x135   :  { %2000 = vmatpush2.bf16.msra.mxu1 %v4528_v11  ;;  %1960 = vmatprep.subr.bf16.mxu0 %v4533_v12  ;;  %v4626_v11 = vld [vmem:[#allocation8 + $0x74c] ss:$16 sps:$4 sm:$0xff]   ;;  %v4621_v12 = vld [vmem:[#allocation8 + $0x548] ss:$16 sps:$4 sm:$0xff]  }
 0x136   :  { %2001 = vmatprep.subr.bf16.mxu1 %v4536_v13  ;;  %v4624_v13 = vld [vmem:[#allocation8 + $0x748] ss:$16 sps:$4 sm:$0xff]  }
 0x138   :  { %1961 = vmatpush2.bf16.msra.mxu0 %v4531_v14  ;;  %v4629_v14 = vld [vmem:[#allocation8 + $0x52c] ss:$16 sps:$4 sm:$0xff]  }
 0x139   :  { %2002 = vmatpush2.bf16.msra.mxu1 %v4534_v15  ;;  %1962 = vmatprep.subr.bf16.mxu0 %v4539_v18  ;;  %v4632_v15 = vld [vmem:[#allocation8 + $0x72c] ss:$16 sps:$4 sm:$0xff]   ;;  %v4627_v18 = vld [vmem:[#allocation8 + $0x528] ss:$16 sps:$4 sm:$0xff]  }
 0x13a   :  { %2003 = vmatprep.subr.bf16.mxu1 %v4542_v19  ;;  %v4630_v19 = vld [vmem:[#allocation8 + $0x728] ss:$16 sps:$4 sm:$0xff]  }
 0x13c   :  { %1963 = vmatpush2.bf16.msra.mxu0 %v4537_v20  ;;  %v4635_v20 = vld [vmem:[#allocation8 + $0x50c] ss:$16 sps:$4 sm:$0xff]  }
 0x13d   :  { %2004 = vmatpush2.bf16.msra.mxu1 %v4540_v21  ;;  %2014 = vmatprep.subr.bf16.mxu0 %v4545_v22  ;;  %v4638_v21 = vld [vmem:[#allocation8 + $0x70c] ss:$16 sps:$4 sm:$0xff]   ;;  %v4633_v22 = vld [vmem:[#allocation8 + $0x508] ss:$16 sps:$4 sm:$0xff]  }
 0x13e   :  { %2055 = vmatprep.subr.bf16.mxu1 %v4548_v23  ;;  %v4636_v23 = vld [vmem:[#allocation8 + $0x708] ss:$16 sps:$4 sm:$0xff]  }
 0x13f   :  { %1965 = vmatmul.mubr.bf16.vlgmr.msra.gmra.mxu0 %v5309_v6  ;;  %v4561_v6 = vld [vmem:[#allocation8 + $0x488] ss:$16 sps:$4 sm:$0xff]  }
 0x140   :  { %2006 = vmatmul.mubr.bf16.vlgmr.msra.gmra.mxu1 %v5311_v7  ;;  %2015 = vmatpush1.bf16.msra.mxu0 %v4543_v24  ;;  %v4564_v7 = vld [vmem:[#allocation8 + $0x688] ss:$16 sps:$4 sm:$0xff]   ;;  %v4641_v24 = vld [vmem:[#allocation9 + $0x74] ss:$8 sps:$4 sm:$0xff]  }
 0x141   :  { %2056 = vmatpush1.bf16.msra.mxu1 %v4546_v25  ;;  %2016 = vmatprep.subr.bf16.mxu0 %v4551_v26  ;;  %v4639_v25 = vld [vmem:[#allocation9 + $0x70] ss:$8 sps:$4 sm:$0xff]   ;;  %v4644_v26 = vld [vmem:[#allocation9 + $0x64] ss:$8 sps:$4 sm:$0xff]  }
 0x142   :  { %2057 = vmatprep.subr.bf16.mxu1 %v4554_v27  ;;  %2046 = vmatprep.mubr.bf16.mxu0 %v5321_v36  ;;  %v4578_v36 = vld [vmem:[#allocation8 + $0x64c] ss:$16 sps:$4 sm:$0xff]  }
 0x143   :  { %2087 = vmatprep.mubr.bf16.mxu1 %v5325_v37  ;;  %v4573_v37 = vld [vmem:[#allocation8 + $0x448] ss:$16 sps:$4 sm:$0xff]  }
 0x144   :  { %2017 = vmatpush1.bf16.msra.mxu0 %v4549_v28 }
 0x145   :  { %2058 = vmatpush1.bf16.msra.mxu1 %v4552_v29  ;;  %2018 = vmatprep.subr.bf16.mxu0 %v4557_v30  ;;  %v4642_v30 = vld [vmem:[#allocation9 + $0x60] ss:$8 sps:$4 sm:$0xff]  }
 0x146   :  { %2059 = vmatprep.subr.bf16.mxu1 %v4560_v31 }
 0x148   :  { %2019 = vmatpush1.bf16.msra.mxu0 %v4555_v32 }
 0x149   :  { %2060 = vmatpush1.bf16.msra.mxu1 %v4558_v33  ;;  %2020 = vmatprep.subr.bf16.mxu0 %v4563_v34  ;;  %v4647_v33 = vld [vmem:[#allocation9 + $0x54] ss:$8 sps:$4 sm:$0xff]  }
 0x14a   :  { %2061 = vmatprep.subr.bf16.mxu1 %v4566_v47 }
 0x14c   :  { %2021 = vmatpush1.bf16.msra.mxu0 %v4561_v6  ;;  %v4645_v6 = vld [vmem:[#allocation9 + $0x50] ss:$8 sps:$4 sm:$0xff]  }
 0x14d   :  { %2062 = vmatpush1.bf16.msra.mxu1 %v4564_v7  ;;  %2022 = vmatprep.subr.bf16.mxu0 %v4569_v51 }
 0x14e   :  { %2063 = vmatprep.subr.bf16.mxu1 %v4572_v35  ;;  %v4687_v35 = vld [vmem:[#allocation9 + $0x170] ss:$8 sps:$4 sm:$0xff]  }
 0x150   :  { %2023 = vmatpush1.bf16.msra.mxu0 %v4567_v38  ;;  %v4692_v38 = vld [vmem:[#allocation9 + $0x164] ss:$8 sps:$4 sm:$0xff]  }
 0x151   :  { %2064 = vmatpush1.bf16.msra.mxu1 %v4570_v39  ;;  %2024 = vmatprep.subr.bf16.mxu0 %v4575_v40  ;;  %v4648_v39 = vld [vmem:[#allocation9 + $0x40] ss:$8 sps:$4 sm:$0xff]  }
 0x152   :  { %2065 = vmatprep.subr.bf16.mxu1 %v4578_v36  ;;  %v4690_v40 = vld [vmem:[#allocation9 + $0x160] ss:$8 sps:$4 sm:$0xff]   ;;  %v4653_v36 = vld [vmem:[#allocation9 + $0x34] ss:$8 sps:$4 sm:$0xff]  }
 0x154   :  { %2025 = vmatpush1.bf16.msra.mxu0 %v4573_v37  ;;  %v4695_v37 = vld [vmem:[#allocation9 + $0x154] ss:$8 sps:$4 sm:$0xff]  }
 0x155   :  { %2066 = vmatpush1.bf16.msra.mxu1 %v4576_v41  ;;  %2026 = vmatprep.subr.bf16.mxu0 %v4581_v42  ;;  %v4651_v41 = vld [vmem:[#allocation9 + $0x30] ss:$8 sps:$4 sm:$0xff]  }
 0x156   :  { %2067 = vmatprep.subr.bf16.mxu1 %v4584_v43  ;;  %v4693_v42 = vld [vmem:[#allocation9 + $0x150] ss:$8 sps:$4 sm:$0xff]   ;;  %v4656_v43 = vld [vmem:[#allocation9 + $0x24] ss:$8 sps:$4 sm:$0xff]  }
 0x158   :  { %2027 = vmatpush1.bf16.msra.mxu0 %v4579_v44  ;;  %v4698_v44 = vld [vmem:[#allocation9 + $0x144] ss:$8 sps:$4 sm:$0xff]  }
 0x159   :  { %2068 = vmatpush1.bf16.msra.mxu1 %v4582_v45  ;;  %2028 = vmatprep.subr.bf16.mxu0 %v4587_v46  ;;  %v4654_v45 = vld [vmem:[#allocation9 + $0x20] ss:$8 sps:$4 sm:$0xff]  }
 0x15a   :  { %2069 = vmatprep.subr.bf16.mxu1 %v4590_v48  ;;  %v4696_v46 = vld [vmem:[#allocation9 + $0x140] ss:$8 sps:$4 sm:$0xff]   ;;  %v4659_v48 = vld [vmem:[#allocation9 + $0x14] ss:$8 sps:$4 sm:$0xff]  }
 0x15c   :  { %2029 = vmatpush1.bf16.msra.mxu0 %v4585_v49  ;;  %v4701_v49 = vld [vmem:[#allocation9 + $0x134] ss:$8 sps:$4 sm:$0xff]  }
 0x15d   :  { %2070 = vmatpush1.bf16.msra.mxu1 %v4588_v50  ;;  %2030 = vmatprep.subr.bf16.mxu0 %v4593_v52  ;;  %v4657_v50 = vld [vmem:[#allocation9 + $0x10] ss:$8 sps:$4 sm:$0xff]  }
 0x15e   :  { %2071 = vmatprep.subr.bf16.mxu1 %v4596_v53  ;;  %v4699_v52 = vld [vmem:[#allocation9 + $0x130] ss:$8 sps:$4 sm:$0xff]   ;;  %v4662_v53 = vld [vmem:[#allocation9 + $0x4] ss:$8 sps:$4 sm:$0xff]  }
 0x160   :  { %2031 = vmatpush2.bf16.msra.mxu0 %v4591_v54  ;;  %v4704_v54 = vld [vmem:[#allocation9 + $0x124] ss:$8 sps:$4 sm:$0xff]  }
 0x161   :  { %2072 = vmatpush2.bf16.msra.mxu1 %v4594_v55  ;;  %2032 = vmatprep.subr.bf16.mxu0 %v4599_v56  ;;  %v4660_v55 = vld [vmem:[#allocation9] ss:$8 sps:$4 sm:$0xff]  }
 0x162   :  { %2073 = vmatprep.subr.bf16.mxu1 %v4602_v57  ;;  %v4702_v56 = vld [vmem:[#allocation9 + $0x120] ss:$8 sps:$4 sm:$0xff]   ;;  %v4665_v57 = vld [vmem:[#allocation9 + $0xf4] ss:$8 sps:$4 sm:$0xff]  }
 0x164   :  { %2033 = vmatpush2.bf16.msra.mxu0 %v4597_v58  ;;  %v4707_v58 = vld [vmem:[#allocation9 + $0x114] ss:$8 sps:$4 sm:$0xff]  }
 0x165   :  { %2074 = vmatpush2.bf16.msra.mxu1 %v4600_v59  ;;  %2034 = vmatprep.subr.bf16.mxu0 %v4605_v60  ;;  %v4663_v59 = vld [vmem:[#allocation9 + $0xf0] ss:$8 sps:$4 sm:$0xff]  }
 0x166   :  { %2075 = vmatprep.subr.bf16.mxu1 %v4608_v61  ;;  %v4705_v60 = vld [vmem:[#allocation9 + $0x110] ss:$8 sps:$4 sm:$0xff]   ;;  %v4668_v61 = vld [vmem:[#allocation9 + $0xe4] ss:$8 sps:$4 sm:$0xff]  }
 0x168   :  { %2035 = vmatpush2.bf16.msra.mxu0 %v4603_v62  ;;  %v4710_v62 = vld [vmem:[#allocation9 + $0x104] ss:$8 sps:$4 sm:$0xff]  }
 0x169   :  { %2076 = vmatpush2.bf16.msra.mxu1 %v4606_v63  ;;  %2036 = vmatprep.subr.bf16.mxu0 %v4611_v0  ;;  %v4666_v63 = vld [vmem:[#allocation9 + $0xe0] ss:$8 sps:$4 sm:$0xff]  }
 0x16a   :  { %2077 = vmatprep.subr.bf16.mxu1 %v4614_v1  ;;  %v4708_v0 = vld [vmem:[#allocation9 + $0x100] ss:$8 sps:$4 sm:$0xff]   ;;  %v4671_v1 = vld [vmem:[#allocation9 + $0xd4] ss:$8 sps:$4 sm:$0xff]  }
 0x16c   :  { %2037 = vmatpush2.bf16.msra.mxu0 %v4609_v2  ;;  %v4713_v2 = vld [vmem:[#allocation9 + $0x1f4] ss:$8 sps:$4 sm:$0xff]  }
 0x16d   :  { %2078 = vmatpush2.bf16.msra.mxu1 %v4612_v3  ;;  %2038 = vmatprep.subr.bf16.mxu0 %v4617_v4  ;;  %v4669_v3 = vld [vmem:[#allocation9 + $0xd0] ss:$8 sps:$4 sm:$0xff]  }
 0x16e   :  { %2079 = vmatprep.subr.bf16.mxu1 %v4620_v5  ;;  %v4711_v4 = vld [vmem:[#allocation9 + $0x1f0] ss:$8 sps:$4 sm:$0xff]   ;;  %v4674_v5 = vld [vmem:[#allocation9 + $0xc4] ss:$8 sps:$4 sm:$0xff]  }
 0x170   :  { %2039 = vmatpush2.bf16.msra.mxu0 %v4615_v8  ;;  %v4716_v8 = vld [vmem:[#allocation9 + $0x1e4] ss:$8 sps:$4 sm:$0xff]  }
 0x171   :  { %2080 = vmatpush2.bf16.msra.mxu1 %v4618_v9  ;;  %2040 = vmatprep.subr.bf16.mxu0 %v4623_v10  ;;  %v4672_v9 = vld [vmem:[#allocation9 + $0xc0] ss:$8 sps:$4 sm:$0xff]  }
 0x172   :  { %2081 = vmatprep.subr.bf16.mxu1 %v4626_v11  ;;  %v4714_v10 = vld [vmem:[#allocation9 + $0x1e0] ss:$8 sps:$4 sm:$0xff]   ;;  %v4677_v11 = vld [vmem:[#allocation9 + $0xb4] ss:$8 sps:$4 sm:$0xff]  }
 0x174   :  { %2041 = vmatpush2.bf16.msra.mxu0 %v4621_v12  ;;  %v4719_v12 = vld [vmem:[#allocation9 + $0x1d4] ss:$8 sps:$4 sm:$0xff]  }
 0x175   :  { %2082 = vmatpush2.bf16.msra.mxu1 %v4624_v13  ;;  %2042 = vmatprep.subr.bf16.mxu0 %v4629_v14  ;;  %v4675_v13 = vld [vmem:[#allocation9 + $0xb0] ss:$8 sps:$4 sm:$0xff]  }
 0x176   :  { %2083 = vmatprep.subr.bf16.mxu1 %v4632_v15  ;;  %v4717_v14 = vld [vmem:[#allocation9 + $0x1d0] ss:$8 sps:$4 sm:$0xff]   ;;  %v4680_v15 = vld [vmem:[#allocation9 + $0xa4] ss:$8 sps:$4 sm:$0xff]  }
 0x178   :  { %2043 = vmatpush2.bf16.msra.mxu0 %v4627_v18  ;;  %v4722_v18 = vld [vmem:[#allocation9 + $0x1c4] ss:$8 sps:$4 sm:$0xff]  }
 0x179   :  { %2084 = vmatpush2.bf16.msra.mxu1 %v4630_v19  ;;  %2044 = vmatprep.subr.bf16.mxu0 %v4635_v20  ;;  %v4678_v19 = vld [vmem:[#allocation9 + $0xa0] ss:$8 sps:$4 sm:$0xff]  }
 0x17a   :  { %2085 = vmatprep.subr.bf16.mxu1 %v4638_v21  ;;  %v4720_v20 = vld [vmem:[#allocation9 + $0x1c0] ss:$8 sps:$4 sm:$0xff]   ;;  %v4683_v21 = vld [vmem:[#allocation9 + $0x94] ss:$8 sps:$4 sm:$0xff]  }
 0x17c   :  { %2045 = vmatpush2.bf16.msra.mxu0 %v4633_v22  ;;  %v4725_v22 = vld [vmem:[#allocation9 + $0x1b4] ss:$8 sps:$4 sm:$0xff]  }
 0x17d   :  { %2086 = vmatpush2.bf16.msra.mxu1 %v4636_v23  ;;  %2541 = vmatprep.subr.bf16.mxu0 %v4641_v24  ;;  %v2113_v23 = vlaneseq  ;;  %v4681_v24 = vld [vmem:[#allocation9 + $0x90] ss:$8 sps:$4 sm:$0xff]  }
 0x17f   :  { %v1802_v27 = vpop.f32.mrf.mxu0  ;;  %2047 = vmatmul.mubr.bf16.vlgmr.msra.gmra.mxu0 %v5331_v16  ;;  %v4650_v16 = vld [vmem:[#allocation9 + $0x44] ss:$8 sps:$4 sm:$0xff]  }
 0x180   :  { %v1843_v28 = vpop.f32.mrf.mxu1  ;;  %2088 = vmatmul.mubr.bf16.vlgmr.msra.gmra.mxu1 %v5335_v17  ;;  %2542 = vmatpush1.bf16.msra.mxu0 %v4639_v25  ;;  %v4689_v17 = vld [vmem:[#allocation9 + $0x174] ss:$8 sps:$4 sm:$0xff]   ;;  %v4723_v25 = vld [vmem:[#allocation9 + $0x1b0] ss:$8 sps:$4 sm:$0xff]  }
 0x181   :  { %v5347_v29 = vadd.f32 %v1843_v28, %v1802_v27  ;;  %v5349_v31 = vpop.f32.mrf.mxu0  ;;  %2543 = vmatprep.subr.bf16.mxu0 %v4644_v26  ;;  %2582 = vmatprep.subr.bf16.mxu1 %v4689_v17  ;;  %v4686_v26 = vld [vmem:[#allocation9 + $0x84] ss:$8 sps:$4 sm:$0xff]   ;;  %v5353_v27 = vshrl.u32 %v2113_v23, 7  ;;  %v4684_v28 = vld [vmem:[#allocation9 + $0x80] ss:$8 sps:$4 sm:$0xff]  }
 0x182   :  { %v5351_v32 = vpop.f32.mrf.mxu1  ;;  %2583 = vmatpush1.bf16.msra.mxu1 %v4687_v35  ;;  %v4726_v17 = vld [vmem:[#allocation9 + $0x1a0] ss:$8 sps:$4 sm:$0xff]  }
 0x183   :  { %v1806_v34 = vpop.f32.mrf.mxu0  ;;  %2584 = vmatprep.subr.bf16.mxu1 %v4692_v38 }
 0x184   :  { %v1847_v47 = vpop.f32.mrf.mxu1  ;;  %2544 = vmatpush1.bf16.msra.mxu0 %v4642_v30  ;;  %v5356_v30 = vsub.s32 0, %v5353_v27  ;;  %v5364_v34 = vsub.s32 1, %v5353_v27 }
 0x185   :  { %v1807_v7 = vpop.f32.mrf.mxu0  ;;  %2545 = vmatprep.subr.bf16.mxu0 %v4647_v33  ;;  %v5361_v33 = vld [vmem:[%s5425_s3] sm:$0xf] }
 0x186   :  { %v1848_v51 = vpop.f32.mrf.mxu1  ;;  %2585 = vmatpush1.bf16.msra.mxu1 %v4690_v40  ;;  %v4728_v7 = vld [vmem:[#allocation9 + $0x1a4] ss:$8 sps:$4 sm:$0xff]   ;;  %v2116_v35 = vrot.slane %v5361_v33, %v5356_v30 }
 0x187   :  { %2586 = vmatprep.subr.bf16.mxu1 %v4695_v37  ;;  %v1846_v51 = vadd.f32 %v5351_v32, %v5349_v31  ;;  %v2120_v37 = vrot.slane %v5361_v33, %v5364_v34  ;;  %v4729_v32 = vld [vmem:[#allocation9 + $0x190] ss:$8 sps:$4 sm:$0xff]  }
 0x188   :  { %2546 = vmatpush1.bf16.msra.mxu0 %v4645_v6 }
 0x189   :  { %2547 = vmatprep.subr.bf16.mxu0 %v4650_v16 }
 0x18a   :  { %2587 = vmatpush1.bf16.msra.mxu1 %v4693_v42 }
 0x18b   :  { %2588 = vmatprep.subr.bf16.mxu1 %v4698_v44 }
 0x18c   :  { %2548 = vmatpush1.bf16.msra.mxu0 %v4648_v39 }
 0x18d   :  { %2549 = vmatprep.subr.bf16.mxu0 %v4653_v36 }
 0x18e   :  { %2589 = vmatpush1.bf16.msra.mxu1 %v4696_v46 }
 0x18f   :  { %2590 = vmatprep.subr.bf16.mxu1 %v4701_v49  ;;  %v4734_v49 = vld [vmem:[#allocation9 + $0x184] ss:$8 sps:$4 sm:$0xff]  }
 0x190   :  { %2550 = vmatpush1.bf16.msra.mxu0 %v4651_v41 }
 0x191   :  { %2551 = vmatprep.subr.bf16.mxu0 %v4656_v43  ;;  %v4731_v43 = vld [vmem:[#allocation9 + $0x194] ss:$8 sps:$4 sm:$0xff]  }
 0x192   :  { %2591 = vmatpush1.bf16.msra.mxu1 %v4699_v52  ;;  %v4732_v52 = vld [vmem:[#allocation9 + $0x180] ss:$8 sps:$4 sm:$0xff]  }
 0x193   :  { %2592 = vmatprep.subr.bf16.mxu1 %v4704_v54 }
 0x194   :  { %2552 = vmatpush1.bf16.msra.mxu0 %v4654_v45 }
 0x195   :  { %2553 = vmatprep.subr.bf16.mxu0 %v4659_v48 }
 0x196   :  { %2593 = vmatpush1.bf16.msra.mxu1 %v4702_v56 }
 0x197   :  { %2594 = vmatprep.subr.bf16.mxu1 %v4707_v58 }
 0x198   :  { %2554 = vmatpush1.bf16.msra.mxu0 %v4657_v50 }
 0x199   :  { %2555 = vmatprep.subr.bf16.mxu0 %v4662_v53 }
 0x19a   :  { %2595 = vmatpush1.bf16.msra.mxu1 %v4705_v60 }
 0x19b   :  { %2596 = vmatprep.subr.bf16.mxu1 %v4710_v62 }
 0x19c   :  { %2556 = vmatpush1.bf16.msra.mxu0 %v4660_v55 }
 0x19d   :  { %2557 = vmatprep.subr.bf16.mxu0 %v4665_v57 }
 0x19e   :  { %2597 = vmatpush1.bf16.msra.mxu1 %v4708_v0  ;;  %v4735_v0 = vld [vmem:[#allocation12 + $0x78] sm:$0xff]  }
 0x19f   :  { %2598 = vmatprep.subr.bf16.mxu1 %v4713_v2  ;;  %v4737_v2 = vld [vmem:[#allocation12 + $0x70] sm:$0xff]  }
 0x1a0   :  { %2558 = vmatpush2.bf16.msra.mxu0 %v4663_v59 }
 0x1a1   :  { %2559 = vmatprep.subr.bf16.mxu0 %v4668_v61 }
 0x1a2   :  { %2599 = vmatpush2.bf16.msra.mxu1 %v4711_v4  ;;  %v4739_v4 = vld [vmem:[#allocation12 + $0x68] sm:$0xff]  }
 0x1a3   :  { %2600 = vmatprep.subr.bf16.mxu1 %v4716_v8  ;;  %v4741_v8 = vld [vmem:[#allocation12 + $0x60] sm:$0xff]  }
 0x1a4   :  { %2560 = vmatpush2.bf16.msra.mxu0 %v4666_v63 }
 0x1a5   :  { %2561 = vmatprep.subr.bf16.mxu0 %v4671_v1  ;;  %v4736_v1 = vld [vmem:[#allocation12 + $0x38] sm:$0xff]  }
 0x1a6   :  { %2601 = vmatpush2.bf16.msra.mxu1 %v4714_v10  ;;  %v4743_v10 = vld [vmem:[#allocation12 + $0x58] sm:$0xff]  }
 0x1a7   :  { %2602 = vmatprep.subr.bf16.mxu1 %v4719_v12  ;;  %v4745_v12 = vld [vmem:[#allocation12 + $0x50] sm:$0xff]  }
 0x1a8   :  { %2562 = vmatpush2.bf16.msra.mxu0 %v4669_v3  ;;  %v4738_v3 = vld [vmem:[#allocation12 + $0x30] sm:$0xff]  }
 0x1a9   :  { %2563 = vmatprep.subr.bf16.mxu0 %v4674_v5  ;;  %v4740_v5 = vld [vmem:[#allocation12 + $0x28] sm:$0xff]  }
 0x1aa   :  { %2603 = vmatpush2.bf16.msra.mxu1 %v4717_v14  ;;  %v2123_v14 = vsub.s32 2, %v5353_v27 }
 0x1ab   :  { %2604 = vmatprep.subr.bf16.mxu1 %v4722_v18 }
 0x1ac   :  { %2564 = vmatpush2.bf16.msra.mxu0 %v4672_v9  ;;  %v4742_v9 = vld [vmem:[#allocation12 + $0x20] sm:$0xff]  }
 0x1ad   :  { %2565 = vmatprep.subr.bf16.mxu0 %v4677_v11  ;;  %v4744_v11 = vld [vmem:[#allocation12 + $0x18] sm:$0xff]  }
 0x1ae   :  { %2605 = vmatpush2.bf16.msra.mxu1 %v4720_v20 }
 0x1af   :  { %2606 = vmatprep.subr.bf16.mxu1 %v4725_v22  ;;  %v2124_v22 = vrot.slane %v5361_v33, %v2123_v14 }
 0x1b0   :  { %2566 = vmatpush2.bf16.msra.mxu0 %v4675_v13  ;;  %v4746_v13 = vld [vmem:[#allocation12 + $0x10] sm:$0xff]  }
 0x1b1   :  { %2567 = vmatprep.subr.bf16.mxu0 %v4680_v15  ;;  %v2127_v15 = vsub.s32 3, %v5353_v27 }
 0x1b2   :  { %2607 = vmatpush2.bf16.msra.mxu1 %v4723_v25 }
 0x1b3   :  { %2608 = vmatprep.subr.bf16.mxu1 %v4728_v7 }
 0x1b4   :  { %2568 = vmatpush2.bf16.msra.mxu0 %v4678_v19 }
 0x1b5   :  { %2569 = vmatprep.subr.bf16.mxu0 %v4683_v21 }
 0x1b6   :  { %2609 = vmatpush2.bf16.msra.mxu1 %v4726_v17 }
 0x1b7   :  { %2610 = vmatprep.subr.bf16.mxu1 %v4731_v43 }
 0x1b8   :  { %2570 = vmatpush2.bf16.msra.mxu0 %v4681_v24 }
 0x1b9   :  { %2571 = vmatprep.subr.bf16.mxu0 %v4686_v26 }
 0x1ba   :  { %2611 = vmatpush2.bf16.msra.mxu1 %v4729_v32 }
 0x1bb   :  { %2612 = vmatprep.subr.bf16.mxu1 %v4734_v49  ;;  %v4754_v49 = vld [vmem:[#allocation14 + $0x20] sm:$0xff]  }
 0x1bc   :  { %2572 = vmatpush2.bf16.msra.mxu0 %v4684_v28  ;;  %v2128_v28 = vrot.slane %v5361_v33, %v2127_v15 }
 0x1bd   :  { %4158 = vmatprep.subr.bf16.mxu0 %v4735_v0 }
 0x1be   :  { %2613 = vmatpush2.bf16.msra.mxu1 %v4732_v52  ;;  %v2209_v52 = vld [vmem:[#allocation11] sm:$0x3] }
 0x1bf   :  { %v1884_v47 = vpop.f32.mrf.mxu0 }
 0x1c0   :  { %v1925_v6 = vpop.f32.mrf.mxu1  ;;  %v1885_v16 = vadd.f32 %v1884_v47, %v5347_v29 }
 0x1c1   :  { %v1886_v38 = vpop.f32.mrf.mxu0 }
 0x1c2   :  { %v1927_v39 = vpop.f32.mrf.mxu1  ;;  %v1926_v40 = vadd.f32 %v1925_v6, %v1885_v16  ;;  %v1887_v36 = vadd.f32 %v1886_v38, %v1846_v51 }
 0x1c3   :  { %v1888_v41 = vpop.f32.mrf.mxu0 }
 0x1c4   :  { %v1929_v42 = vpop.f32.mrf.mxu1  ;;  %v2133_v44 = vadd.f32 %v2116_v35, %v1926_v40  ;;  %v1928_v31 = vadd.f32 %v1927_v39, %v1887_v36  ;;  %v4747_v41 = vld [vmem:[#allocation12 + $0x48] sm:$0xff]  }
 0x1c5   :  { %v1889_v29 = vpop.f32.mrf.mxu0  ;;  %v4748_v42 = vld [vmem:[#allocation12 + $0x8] sm:$0xff]  }
 0x1c6   :  { %v1930_v45 = vpop.f32.mrf.mxu1  ;;  %v2134_v46 = vadd.f32 %v2120_v37, %v1928_v31  ;;  %v2137_v48 = vmax.f32 %v2133_v44, 0.0  ;;  %v4749_v44 = vld [vmem:[#allocation12 + $0x40] sm:$0xff]   ;;  %v4751_v29 = vld [vmem:[#allocation14 + $0x38] sm:$0xff]  }
 0x1c7   :  { %v4750_v31 = vld [vmem:[#allocation12] sm:$0xff]   ;;  %v5157_v45 = vmov 0.0  }
 0x1c8   :  { %v2138_v50 = vmax.f32 %v2134_v46, 0.0  ;;  %v2141_v54 = vpack.c.bf16 %v2137_v48, %v2137_v48  ;;  %4194 = vmatprep.subr.bf16.mxu1 %v5157_v45  ;;  %v4752_v46 = vld [vmem:[#allocation14 + $0x30] sm:$0xff]   ;;  %v4753_v48 = vld [vmem:[#allocation14 + $0x28] sm:$0xff]  }
 0x1ca   :  { %v2142_v53 = vpack.c.bf16 %v2138_v50, %v2138_v50  ;;  %v4755_v50 = vld [vmem:[#allocation14 + $0x18] sm:$0xff]  }
 0x1cc   :  { %2573 = vmatprep.mubr.bf16.mxu0 %v2142_v53  ;;  %v2214_v53 = vrot.slane %v2209_v52, %v5356_v30 }
 0x1cd   :  { %2574 = vmatmul.mubr.bf16.vlgmr.msra.gmra.mxu0 %v2141_v54  ;;  %v2218_v54 = vrot.slane %v2209_v52, %v5364_v34  ;;  %v4786_v52 = vld [vmem:[#allocation17 + $0x4] ss:$8 sps:$4 sm:$0xff]  }
 0x1ce   :  { %4159 = vmatpush3.bf16.msra.mxu0 %v4736_v1 }
 0x1cf   :  { %4160 = vmatprep.subr.bf16.mxu0 %v4737_v2 }
 0x1d2   :  { %4161 = vmatpush3.bf16.msra.mxu0 %v4738_v3  ;;  %v4756_v3 = vld [vmem:[#allocation14 + $0x10] sm:$0xff]  }
 0x1d3   :  { %4162 = vmatprep.subr.bf16.mxu0 %v4739_v4  ;;  %v4757_v4 = vld [vmem:[#allocation14 + $0x8] sm:$0xff]  }
 0x1d6   :  { %4163 = vmatpush3.bf16.msra.mxu0 %v4740_v5  ;;  %v4758_v5 = vld [vmem:[#allocation14] sm:$0xff]  }
 0x1d7   :  { %4164 = vmatprep.subr.bf16.mxu0 %v4741_v8 }
 0x1da   :  { %4165 = vmatpush3.bf16.msra.mxu0 %v4742_v9  ;;  %v4042_v9 = vld [vmem:[%s5429_s7] ss:$0 sm:$0xff] }
 0x1db   :  { %4166 = vmatprep.subr.bf16.mxu0 %v4743_v10 }
 0x1de   :  { %4167 = vmatpush3.bf16.msra.mxu0 %v4744_v11 }
 0x1df   :  { %4168 = vmatprep.subr.bf16.mxu0 %v4745_v12 }
 0x1e2   :  { %4169 = vmatpush3.bf16.msra.mxu0 %v4746_v13 }
 0x1e3   :  { %4170 = vmatprep.subr.bf16.mxu0 %v4747_v41 }
 0x1e6   :  { %4171 = vmatpush3.bf16.msra.mxu0 %v4748_v42  ;;  %v4769_v42 = vld [vmem:[#allocation17 + $0x50] ss:$8 sps:$4 sm:$0xff]  }
 0x1e7   :  { %4172 = vmatprep.subr.bf16.mxu0 %v4749_v44 }
 0x1ea   :  { %4173 = vmatpush3.bf16.msra.mxu0 %v4750_v31  ;;  %v4772_v31 = vld [vmem:[#allocation17 + $0x40] ss:$8 sps:$4 sm:$0xff]  }
 0x1eb   :  { %4214 = vmatprep.subr.bf16.mxu0 %v5157_v45 }
 0x1ff   :  { %v1966_v55 = vpop.f32.mrf.mxu0 }
 0x200   :  { %v2007_v56 = vpop.f32.mrf.mxu1 }
 0x201   :  { %v2008_v57 = vadd.f32 %v2007_v56, %v1966_v55  ;;  %v1968_v58 = vpop.f32.mrf.mxu0 }
 0x202   :  { %v2009_v59 = vpop.f32.mrf.mxu1 }
 0x203   :  { %v1970_v60 = vpop.f32.mrf.mxu0  ;;  %v2010_v20 = vadd.f32 %v2009_v59, %v1968_v58 }
 0x204   :  { %v2011_v61 = vpop.f32.mrf.mxu1 }
 0x205   :  { %v1971_v62 = vpop.f32.mrf.mxu0 }
 0x206   :  { %v2012_v63 = vpop.f32.mrf.mxu1 }
 0x23f   :  { %v2048_v18 = vpop.f32.mrf.mxu0 }
 0x240   :  { %v2089_v19 = vpop.f32.mrf.mxu1  ;;  %v2049_v21 = vadd.f32 %v2048_v18, %v2008_v57 }
 0x241   :  { %v2050_v23 = vpop.f32.mrf.mxu0 }
 0x242   :  { %v2091_v24 = vpop.f32.mrf.mxu1  ;;  %v2090_v25 = vadd.f32 %v2089_v19, %v2049_v21  ;;  %v2051_v26 = vadd.f32 %v2050_v23, %v2010_v20  ;;  %v4759_v21 = vld [vmem:[#allocation15 + $0x18] sm:$0xff]   ;;  %v4761_v23 = vld [vmem:[#allocation15 + $0x8] sm:$0xff]  }
 0x243   :  { %v2052_v47 = vpop.f32.mrf.mxu0 }
 0x244   :  { %v2093_v6 = vpop.f32.mrf.mxu1  ;;  %v2135_v7 = vadd.f32 %v2124_v22, %v2090_v25  ;;  %v2092_v51 = vadd.f32 %v2091_v24, %v2051_v26  ;;  %v4760_v22 = vld [vmem:[#allocation15 + $0x10] sm:$0xff]  }
 0x245   :  { %v2053_v16 = vpop.f32.mrf.mxu0  ;;  %v4059_v24 = vld [vmem:[%s5431_s9] ss:$0 sm:$0xff] }
 0x246   :  { %v2094_v35 = vpop.f32.mrf.mxu1  ;;  %v2136_v17 = vadd.f32 %v2128_v28, %v2092_v51  ;;  %v2139_v38 = vmax.f32 %v2135_v7, 0.0  ;;  %v4762_v16 = vld [vmem:[#allocation15] sm:$0xff]  }
 0x248   :  { %v2140_v39 = vmax.f32 %v2136_v17, 0.0  ;;  %v2143_v36 = vpack.c.bf16 %v2139_v38, %v2139_v38  ;;  %v4763_v17 = vld [vmem:[#allocation17 + $0x70] ss:$8 sps:$4 sm:$0xff]   ;;  %v4765_v38 = vld [vmem:[#allocation17 + $0x74] ss:$8 sps:$4 sm:$0xff]  }
 0x24a   :  { %v2144_v40 = vpack.c.bf16 %v2140_v39, %v2140_v39  ;;  %v4768_v39 = vld [vmem:[#allocation17 + $0x64] ss:$8 sps:$4 sm:$0xff]  }
 0x24c   :  { %2614 = vmatprep.mubr.bf16.mxu1 %v2144_v40  ;;  %v4766_v40 = vld [vmem:[#allocation17 + $0x60] ss:$8 sps:$4 sm:$0xff]  }
 0x24d   :  { %2615 = vmatmul.mubr.bf16.vlgmr.msra.gmra.mxu1 %v2143_v36  ;;  %v4771_v36 = vld [vmem:[#allocation17 + $0x54] ss:$8 sps:$4 sm:$0xff]  }
 0x24e   :  { %4195 = vmatpush3.bf16.msra.mxu1 %v4751_v29  ;;  %4210 = vmatprep.mubr.msk.bf16.mxu1 %vm5158_vm0, %v5157_v45  ;;  %v4777_v29 = vld [vmem:[#allocation17 + $0x34] ss:$8 sps:$4 sm:$0xff]  }
 0x24f   :  { %4196 = vmatprep.subr.bf16.mxu1 %v5157_v45 }
 0x252   :  { %4197 = vmatpush3.bf16.msra.mxu1 %v4752_v46  ;;  %v4780_v46 = vld [vmem:[#allocation17 + $0x24] ss:$8 sps:$4 sm:$0xff]  }
 0x253   :  { %4198 = vmatprep.subr.bf16.mxu1 %v5157_v45 }
 0x256   :  { %4199 = vmatpush3.bf16.msra.mxu1 %v4753_v48  ;;  %v4778_v48 = vld [vmem:[#allocation17 + $0x20] ss:$8 sps:$4 sm:$0xff]  }
 0x257   :  { %4200 = vmatprep.subr.bf16.mxu1 %v5157_v45 }
 0x25a   :  { %4201 = vmatpush3.bf16.msra.mxu1 %v4754_v49  ;;  %v4783_v49 = vld [vmem:[#allocation17 + $0x14] ss:$8 sps:$4 sm:$0xff]  }
 0x25b   :  { %4202 = vmatprep.subr.bf16.mxu1 %v5157_v45 }
 0x25e   :  { %4203 = vmatpush3.bf16.msra.mxu1 %v4755_v50  ;;  %v4781_v50 = vld [vmem:[#allocation17 + $0x10] ss:$8 sps:$4 sm:$0xff]  }
 0x25f   :  { %4204 = vmatprep.subr.bf16.mxu1 %v5157_v45 }
 0x262   :  { %4205 = vmatpush3.bf16.msra.mxu1 %v4756_v3  ;;  %v4817_v3 = vld [vmem:[#allocation18 + $0x40] ss:$16 sps:$4 sm:$0xff]  }
 0x263   :  { %4206 = vmatprep.subr.bf16.mxu1 %v5157_v45 }
 0x266   :  { %4207 = vmatpush3.bf16.msra.mxu1 %v4757_v4  ;;  %v4825_v4 = vld [vmem:[#allocation18 + $0x24] ss:$16 sps:$4 sm:$0xff]  }
 0x267   :  { %4208 = vmatprep.subr.bf16.mxu1 %v5157_v45 }
 0x26a   :  { %4209 = vmatpush3.bf16.msra.mxu1 %v4758_v5  ;;  %v4823_v5 = vld [vmem:[#allocation18 + $0x20] ss:$16 sps:$4 sm:$0xff]  }
 0x26b   :  { %3118 = vmatprep.subr.bf16.mxu1 %v4765_v38 }
 0x28d   :  { %v2575_v37 = vpop.f32.mrf.mxu0 }
 0x28e   :  { %v2576_v55 = vadd.f32 %v2575_v37, %v2214_v53  ;;  %v2918_v37 = vld [vmem:[#allocation6] sm:$0xff]  ;;  %v4784_v53 = vld [vmem:[#allocation17] ss:$8 sps:$4 sm:$0xff]  }
 0x28f   :  { %v2577_v43 = vpop.f32.mrf.mxu0 }
 0x290   :  { %v2578_v57 = vadd.f32 %v2577_v43, %v2218_v54  ;;  %v5159_v54 = vmov 0  }
 0x291   :  { %v2579_v33 = vpop.f32.mrf.mxu0 }
 0x292   :  { %v4774_v33 = vld [vmem:[#allocation17 + $0x44] ss:$8 sps:$4 sm:$0xff]  }
 0x293   :  { %v2580_v32 = vpop.f32.mrf.mxu0 }
 0x30d   :  { %v2616_v56 = vpop.f32.mrf.mxu1 }
 0x30e   :  { %v2617_v58 = vadd.f32 %v2616_v56, %v2576_v55  ;;  %v4787_v55 = vld [vmem:[#allocation18 + $0xe0] ss:$16 sps:$4 sm:$0xff]   ;;  %v4789_v56 = vld [vmem:[#allocation18 + $0xe4] ss:$16 sps:$4 sm:$0xff]  }
 0x30f   :  { %v2618_v59 = vpop.f32.mrf.mxu1 }
 0x310   :  { %v2619_v60 = vadd.f32 %v2618_v59, %v2578_v57  ;;  %v2623_v61 = vmax.f32 %v2617_v58, 0.0  ;;  %v4792_v57 = vld [vmem:[#allocation18 + $0xec] ss:$16 sps:$4 sm:$0xff]   ;;  %v4795_v58 = vld [vmem:[#allocation18 + $0xc4] ss:$16 sps:$4 sm:$0xff]  }
 0x311   :  { %v2620_v62 = vpop.f32.mrf.mxu1  ;;  %v4793_v59 = vld [vmem:[#allocation18 + $0xc0] ss:$16 sps:$4 sm:$0xff]  }
 0x312   :  { %v2624_v63 = vmax.f32 %v2619_v60, 0.0  ;;  %v2625_v2 = vpack.c.bf16 %v2623_v61, %v2623_v61  ;;  %v4801_v60 = vld [vmem:[#allocation18 + $0xa4] ss:$16 sps:$4 sm:$0xff]   ;;  %v4799_v61 = vld [vmem:[#allocation18 + $0xa0] ss:$16 sps:$4 sm:$0xff]  }
 0x313   :  { %v2621_v0 = vpop.f32.mrf.mxu1  ;;  %v4807_v62 = vld [vmem:[#allocation18 + $0x84] ss:$16 sps:$4 sm:$0xff]  }
 0x314   :  { %v2626_v1 = vpack.c.bf16 %v2624_v63, %v2624_v63  ;;  %v4805_v63 = vld [vmem:[#allocation18 + $0x80] ss:$16 sps:$4 sm:$0xff]   ;;  %v4813_v0 = vld [vmem:[#allocation18 + $0x64] ss:$16 sps:$4 sm:$0xff]  }
 0x316   :  { %2794 = vmatprep.mubr.bf16.mxu0 %v2626_v1  ;;  %v4811_v1 = vld [vmem:[#allocation18 + $0x60] ss:$16 sps:$4 sm:$0xff]  }
 0x317   :  { %2795 = vmatmul.mubr.bf16.vlgmr.msra.gmra.mxu0 %v2625_v2  ;;  %v4819_v2 = vld [vmem:[#allocation18 + $0x44] ss:$16 sps:$4 sm:$0xff]  }
 0x318   :  { %4222 = vmatprep.mubr.msk.bf16.mxu0 %vm5158_vm0, %v5157_v45  ;;  %4215 = vmatpush3.bf16.msra.mxu0 %v4759_v21 }
 0x319   :  { %4216 = vmatprep.subr.bf16.mxu0 %v5157_v45 }
 0x31c   :  { %4217 = vmatpush3.bf16.msra.mxu0 %v4760_v22 }
 0x31d   :  { %4218 = vmatprep.subr.bf16.mxu0 %v5157_v45 }
 0x320   :  { %4219 = vmatpush3.bf16.msra.mxu0 %v4761_v23  ;;  %v4853_v23 = vld [vmem:[#allocation18 + $0x180] ss:$16 sps:$4 sm:$0xff]  }
 0x321   :  { %4220 = vmatprep.subr.bf16.mxu0 %v5157_v45  ;;  %v4775_v45 = vld [vmem:[#allocation17 + $0x30] ss:$8 sps:$4 sm:$0xff]  }
 0x324   :  { %4221 = vmatpush3.bf16.msra.mxu0 %v4762_v16  ;;  %v4790_v16 = vld [vmem:[#allocation18 + $0xe8] ss:$16 sps:$4 sm:$0xff]  }
 0x325   :  { %3569 = vmatprep.subr.bf16.mxu0 %v4789_v56  ;;  %v4856_v56 = vld [vmem:[#allocation18 + $0x188] ss:$16 sps:$4 sm:$0xff]  }
 0x3d7   :  { %v4174_v8 = vpop.f32.mrf.mxu0 }
 0x3d9   :  { %v4175_v10 = vpop.f32.mrf.mxu0 }
 0x3da   :  { %v4176_v11 = vadd.f32 %v4175_v10, %v4174_v8  ;;  %v4831_v8 = vld [vmem:[#allocation18 + $0x4] ss:$16 sps:$4 sm:$0xff]  }
 0x3db   :  { %v4177_v12 = vpop.f32.mrf.mxu0  ;;  %v4837_v10 = vld [vmem:[#allocation18 + $0x1e4] ss:$16 sps:$4 sm:$0xff]  }
 0x3dc   :  { %v2797_v13 = vadd.f32 %v4176_v11, %v4042_v9  ;;  %v4829_v9 = vld [vmem:[#allocation18] ss:$16 sps:$4 sm:$0xff]   ;;  %v4843_v12 = vld [vmem:[#allocation18 + $0x1c4] ss:$16 sps:$4 sm:$0xff]  }
 0x3dd   :  { %v4178_v18 = vpop.f32.mrf.mxu0  ;;  %v4835_v11 = vld [vmem:[#allocation18 + $0x1e0] ss:$16 sps:$4 sm:$0xff]  }
 0x3de   :  { %v2802_v19 = vmax.f32 %v2797_v13, 0.0  ;;  %v4841_v13 = vld [vmem:[#allocation18 + $0x1c0] ss:$16 sps:$4 sm:$0xff]   ;;  %v4849_v18 = vld [vmem:[#allocation18 + $0x1a4] ss:$16 sps:$4 sm:$0xff]  }
 0x3e0   :  { %v2803_v20 = vpack.c.bf16 %v2802_v19, %v2802_v19  ;;  %v4847_v19 = vld [vmem:[#allocation18 + $0x1a0] ss:$16 sps:$4 sm:$0xff]  }
 0x3e2   :  { %4211 = vmatmul.mubr.bf16.vlgmr.msra.gmra.mxu1 %v2803_v20  ;;  %v4855_v20 = vld [vmem:[#allocation18 + $0x184] ss:$16 sps:$4 sm:$0xff]  }
 0x3e3   :  { %3119 = vmatpush1.bf16.msra.mxu1 %v4763_v17  ;;  %3150 = vmatprep.mubr.bf16.mxu1 %v5159_v54  ;;  %v4798_v17 = vld [vmem:[#allocation18 + $0xcc] ss:$16 sps:$4 sm:$0xff]   ;;  %v4850_v54 = vld [vmem:[#allocation18 + $0x1a8] ss:$16 sps:$4 sm:$0xff]  }
 0x3e4   :  { %3120 = vmatprep.subr.bf16.mxu1 %v4768_v39 }
 0x3e7   :  { %3121 = vmatpush1.bf16.msra.mxu1 %v4766_v40  ;;  %v4796_v40 = vld [vmem:[#allocation18 + $0xc8] ss:$16 sps:$4 sm:$0xff]  }
 0x3e8   :  { %3122 = vmatprep.subr.bf16.mxu1 %v4771_v36  ;;  %v4804_v36 = vld [vmem:[#allocation18 + $0xac] ss:$16 sps:$4 sm:$0xff]  }
 0x3eb   :  { %3123 = vmatpush1.bf16.msra.mxu1 %v4769_v42  ;;  %v4808_v42 = vld [vmem:[#allocation18 + $0x88] ss:$16 sps:$4 sm:$0xff]  }
 0x3ec   :  { %3124 = vmatprep.subr.bf16.mxu1 %v4774_v33  ;;  %v4814_v33 = vld [vmem:[#allocation18 + $0x68] ss:$16 sps:$4 sm:$0xff]  }
 0x3ef   :  { %3125 = vmatpush1.bf16.msra.mxu1 %v4772_v31  ;;  %v4820_v31 = vld [vmem:[#allocation18 + $0x48] ss:$16 sps:$4 sm:$0xff]  }
 0x3f0   :  { %3126 = vmatprep.subr.bf16.mxu1 %v4777_v29  ;;  %v4826_v29 = vld [vmem:[#allocation18 + $0x28] ss:$16 sps:$4 sm:$0xff]  }
 0x3f3   :  { %3127 = vmatpush1.bf16.msra.mxu1 %v4775_v45  ;;  %v4834_v45 = vld [vmem:[#allocation18 + $0xc] ss:$16 sps:$4 sm:$0xff]  }
 0x3f4   :  { %3128 = vmatprep.subr.bf16.mxu1 %v4780_v46  ;;  %v4832_v46 = vld [vmem:[#allocation18 + $0x8] ss:$16 sps:$4 sm:$0xff]  }
 0x3f7   :  { %3129 = vmatpush1.bf16.msra.mxu1 %v4778_v48  ;;  %v4840_v48 = vld [vmem:[#allocation18 + $0x1ec] ss:$16 sps:$4 sm:$0xff]  }
 0x3f8   :  { %3130 = vmatprep.subr.bf16.mxu1 %v4783_v49  ;;  %v4838_v49 = vld [vmem:[#allocation18 + $0x1e8] ss:$16 sps:$4 sm:$0xff]  }
 0x3fb   :  { %3131 = vmatpush1.bf16.msra.mxu1 %v4781_v50  ;;  %v4846_v50 = vld [vmem:[#allocation18 + $0x1cc] ss:$16 sps:$4 sm:$0xff]  }
 0x3fc   :  { %3132 = vmatprep.subr.bf16.mxu1 %v4786_v52  ;;  %v4844_v52 = vld [vmem:[#allocation18 + $0x1c8] ss:$16 sps:$4 sm:$0xff]  }
 0x3ff   :  { %3133 = vmatpush1.bf16.msra.mxu1 %v4784_v53  ;;  %v4852_v53 = vld [vmem:[#allocation18 + $0x1ac] ss:$16 sps:$4 sm:$0xff]  }
 0x400   :  { %3610 = vmatprep.subr.bf16.mxu1 %v4792_v57  ;;  %v4864_v57 = vld [vmem:[#allocation18 + $0x16c] ss:$16 sps:$4 sm:$0xff]  }
 0x4a2   :  { %v2909_v25 = vpop.f32.mrf.mxu1 }
 0x4a3   :  { %v2910_v26 = vadd.f32 %v4059_v24, %v2909_v25  ;;  %v4861_v24 = vld [vmem:[#allocation18 + $0x164] ss:$16 sps:$4 sm:$0xff]   ;;  %v4859_v25 = vld [vmem:[#allocation18 + $0x160] ss:$16 sps:$4 sm:$0xff]  }
 0x4a4   :  { %v4212_v28 = vpop.f32.mrf.mxu1 }
 0x4a5   :  { %3678 = vst [vmem:[#allocation21] sm:$0xff] %v2910_v26  ;;  %v2915_v47 = vmul.f32 0.5, %v2910_v26  ;;  %v4865_v28 = vld [vmem:[#allocation18 + $0x140] ss:$16 sps:$4 sm:$0xff]  }
 0x4a6   :  { %v2912_v6 = vpop.f32.mrf.mxu1 }
 0x4a7   :  { %v2916_v7 = vmul.f32 1.442695, %v2915_v47  ;;  %v4068_v47 = vld [vmem:[%s5433_s11] ss:$0 sm:$0xff] }
 0x4a8   :  { %v4213_v51 = vpop.f32.mrf.mxu1 }
 0x4a9   :  { %4883 = vpow2.f32 %v2916_v7 }
 0x4b6   :  { %v4884_v35 = vpop.eup %4883 }
 0x4b7   :  { %2920 = vrot.lane.b32.xlu0 %v4884_v35, %s5146_s25 }
 0x529   :  { %v2921_v41 = vpop.permute.xlu0 %2920 }
 0x52a   :  { %v2923_v43 = vmul.f32 %v2921_v41, %v2918_v37  ;;  %v4802_v37 = vld [vmem:[#allocation18 + $0xa8] ss:$16 sps:$4 sm:$0xff]   ;;  %v4810_v41 = vld [vmem:[#allocation18 + $0x8c] ss:$16 sps:$4 sm:$0xff]  }
 0x52c   :  { %v5390_v44 = vadd.f32 %v2923_v43, %v2910_v26  ;;  %v4867_v26 = vld [vmem:[#allocation18 + $0x144] ss:$16 sps:$4 sm:$0xff]   ;;  %v4816_v43 = vld [vmem:[#allocation18 + $0x6c] ss:$16 sps:$4 sm:$0xff]  }
 0x52e   :  { %v2925_v32 = vpack.c.bf16 %v5390_v44, %v5390_v44  ;;  %3674 = vrot.lane.b32.xlu0 %v5390_v44, %s5146_s25 }
 0x530   :  { %4223 = vmatmul.mubr.msk.bf16.vlgmr.msra.gmra.mxu0 %vm2965_vm1, %v2925_v32  ;;  %v4828_v32 = vld [vmem:[#allocation18 + $0x2c] ss:$16 sps:$4 sm:$0xff]  }
 0x531   :  { %3570 = vmatpush1.bf16.msra.mxu0 %v4787_v55  ;;  %v4858_v55 = vld [vmem:[#allocation18 + $0x18c] ss:$16 sps:$4 sm:$0xff]  }
 0x532   :  { %3571 = vmatprep.subr.bf16.mxu0 %v4795_v58  ;;  %v4862_v58 = vld [vmem:[#allocation18 + $0x168] ss:$16 sps:$4 sm:$0xff]  }
 0x535   :  { %3572 = vmatpush1.bf16.msra.mxu0 %v4793_v59  ;;  %v4870_v59 = vld [vmem:[#allocation18 + $0x14c] ss:$16 sps:$4 sm:$0xff]  }
 0x536   :  { %3573 = vmatprep.subr.bf16.mxu0 %v4801_v60  ;;  %v4868_v60 = vld [vmem:[#allocation18 + $0x148] ss:$16 sps:$4 sm:$0xff]  }
 0x539   :  { %3574 = vmatpush1.bf16.msra.mxu0 %v4799_v61  ;;  %v4873_v61 = vld [vmem:[#allocation18 + $0x124] ss:$16 sps:$4 sm:$0xff]  }
 0x53a   :  { %3575 = vmatprep.subr.bf16.mxu0 %v4807_v62  ;;  %v4876_v62 = vld [vmem:[#allocation18 + $0x12c] ss:$16 sps:$4 sm:$0xff]  }
 0x53d   :  { %3576 = vmatpush1.bf16.msra.mxu0 %v4805_v63  ;;  %v4871_v63 = vld [vmem:[#allocation18 + $0x120] ss:$16 sps:$4 sm:$0xff]  }
 0x53e   :  { %3577 = vmatprep.subr.bf16.mxu0 %v4813_v0  ;;  %v4874_v0 = vld [vmem:[#allocation18 + $0x128] ss:$16 sps:$4 sm:$0xff]  }
 0x541   :  { %3578 = vmatpush1.bf16.msra.mxu0 %v4811_v1  ;;  %v4879_v1 = vld [vmem:[#allocation18 + $0x104] ss:$16 sps:$4 sm:$0xff]  }
 0x542   :  { %3579 = vmatprep.subr.bf16.mxu0 %v4819_v2  ;;  %v4882_v2 = vld [vmem:[#allocation18 + $0x10c] ss:$16 sps:$4 sm:$0xff]  }
 0x545   :  { %3580 = vmatpush1.bf16.msra.mxu0 %v4817_v3  ;;  %v4877_v3 = vld [vmem:[#allocation18 + $0x100] ss:$16 sps:$4 sm:$0xff]  }
 0x546   :  { %3581 = vmatprep.subr.bf16.mxu0 %v4825_v4  ;;  %v4880_v4 = vld [vmem:[#allocation18 + $0x108] ss:$16 sps:$4 sm:$0xff]  }
 0x549   :  { %3582 = vmatpush1.bf16.msra.mxu0 %v4823_v5  ;;  %v3026_v5 = vld [vmem:[%s5435_s13] sm:$0x3]  ;;  %s3696_s13 = sshll.u32 %s5160_s27, 4  ;;  %s3697_s13 = int_to_ptr.vmem [resolvable:$true] %s3696_s13 }
 0x54a   :  { %3583 = vmatprep.subr.bf16.mxu0 %v4831_v8  ;;  %v3031_v8 = vrot.slane %v3026_v5, %v5356_v30  ;;  %s5085_s22 = scalar_lea.vmem %s3697_s13, 256  ;;  %p5090_p9 = scmp.lt.s32.totalorder %s3697_s13, %s3697_s13 }
 0x54b   :  { %p5086_p8 = scmp.ne.s32.totalorder %s3697_s13, %s5085_s22  ;;  %p5091_p10 = scmp.lt.s32.totalorder %s5085_s22, %s5085_s22 }
 0x54d   :  { %3584 = vmatpush1.bf16.msra.mxu0 %v4829_v9  ;;  %v3035_v9 = vrot.slane %v3026_v5, %v5364_v34  ;;  %p5092_p11 = por %p5091_p10, %p5090_p9 }
 0x54e   :  { %3585 = vmatprep.subr.bf16.mxu0 %v4837_v10 }
 0x54f   :  { %p5093_p12 = pnand %p5092_p11, %p5086_p8 }
 0x551   :  { %3586 = vmatpush2.bf16.msra.mxu0 %v4835_v11 }
 0x552   :  { %3587 = vmatprep.subr.bf16.mxu0 %v4843_v12 }
 0x555   :  { %3588 = vmatpush2.bf16.msra.mxu0 %v4841_v13 }
 0x556   :  { %3589 = vmatprep.subr.bf16.mxu0 %v4849_v18 }
 0x559   :  { %3590 = vmatpush2.bf16.msra.mxu0 %v4847_v19 }
 0x55a   :  { %3591 = vmatprep.subr.bf16.mxu0 %v4855_v20 }
 0x55d   :  { %3592 = vmatpush2.bf16.msra.mxu0 %v4853_v23 }
 0x55e   :  { %3593 = vmatprep.subr.bf16.mxu0 %v4861_v24 }
 0x561   :  { %3594 = vmatpush2.bf16.msra.mxu0 %v4859_v25 }
 0x562   :  { %3595 = vmatprep.subr.bf16.mxu0 %v4867_v26 }
 0x565   :  { %3596 = vmatpush2.bf16.msra.mxu0 %v4865_v28 }
 0x566   :  { %3597 = vmatprep.subr.bf16.mxu0 %v4873_v61 }
 0x569   :  { %3598 = vmatpush2.bf16.msra.mxu0 %v4871_v63 }
 0x56a   :  { %3599 = vmatprep.subr.bf16.mxu0 %v4879_v1 }
 0x56d   :  { %3600 = vmatpush2.bf16.msra.mxu0 %v4877_v3 }
 0x5a0   :  { %v3675_v21 = vpop.permute.xlu0 %3674 }
 0x5a1   :  { %v3677_v22 = vsel %vm2965_vm1, %v5390_v44, %v3675_v21  ;;  %v4822_v44 = vld [vmem:[#allocation18 + $0x4c] ss:$16 sps:$4 sm:$0xff]  }
 0x5a2   :  { %3679 = vst [vmem:[#allocation21 + $0x8] sm:$0xff] %v3677_v22 }
 0x5f0   :  { %v3003_v6 = vpop.f32.mrf.mxu0 }
 0x5f1   :  { %v3004_v7 = vadd.f32 %v4068_v47, %v3003_v6 }
 0x5f2   :  { %v4224_v51 = vpop.f32.mrf.mxu0 }
 0x5f3   :  { %v3009_v35 = vpack.c.bf16 %v3004_v7, %v3004_v7 }
 0x5f4   :  { %v3006_v38 = vpop.f32.mrf.mxu0 }
 0x5f5   :  { %3151 = vmatmul.mubr.bf16.vlgmr.msra.gmra.mxu1 %v3009_v35 }
 0x5f6   :  { %v4225_v39 = vpop.f32.mrf.mxu0  ;;  %3611 = vmatpush1.bf16.msra.mxu1 %v4790_v16 }
 0x5f7   :  { %3612 = vmatprep.subr.bf16.mxu1 %v4798_v17 }
 0x5fa   :  { %3613 = vmatpush1.bf16.msra.mxu1 %v4796_v40 }
 0x5fb   :  { %3614 = vmatprep.subr.bf16.mxu1 %v4804_v36 }
 0x5fe   :  { %3615 = vmatpush1.bf16.msra.mxu1 %v4802_v37 }
 0x5ff   :  { %3616 = vmatprep.subr.bf16.mxu1 %v4810_v41 }
 0x602   :  { %3617 = vmatpush1.bf16.msra.mxu1 %v4808_v42 }
 0x603   :  { %3618 = vmatprep.subr.bf16.mxu1 %v4816_v43 }
 0x606   :  { %3619 = vmatpush1.bf16.msra.mxu1 %v4814_v33 }
 0x607   :  { %3620 = vmatprep.subr.bf16.mxu1 %v4822_v44 }
 0x60a   :  { %3621 = vmatpush1.bf16.msra.mxu1 %v4820_v31 }
 0x60b   :  { %3622 = vmatprep.subr.bf16.mxu1 %v4828_v32 }
 0x60e   :  { %3623 = vmatpush1.bf16.msra.mxu1 %v4826_v29 }
 0x60f   :  { %3624 = vmatprep.subr.bf16.mxu1 %v4834_v45 }
 0x612   :  { %3625 = vmatpush1.bf16.msra.mxu1 %v4832_v46 }
 0x613   :  { %3626 = vmatprep.subr.bf16.mxu1 %v4840_v48 }
 0x616   :  { %3627 = vmatpush2.bf16.msra.mxu1 %v4838_v49 }
 0x617   :  { %3628 = vmatprep.subr.bf16.mxu1 %v4846_v50 }
 0x61a   :  { %3629 = vmatpush2.bf16.msra.mxu1 %v4844_v52 }
 0x61b   :  { %3630 = vmatprep.subr.bf16.mxu1 %v4852_v53 }
 0x61e   :  { %3631 = vmatpush2.bf16.msra.mxu1 %v4850_v54 }
 0x61f   :  { %3632 = vmatprep.subr.bf16.mxu1 %v4858_v55 }
 0x622   :  { %3633 = vmatpush2.bf16.msra.mxu1 %v4856_v56 }
 0x623   :  { %3634 = vmatprep.subr.bf16.mxu1 %v4864_v57 }
 0x626   :  { %3635 = vmatpush2.bf16.msra.mxu1 %v4862_v58 }
 0x627   :  { %3636 = vmatprep.subr.bf16.mxu1 %v4870_v59 }
 0x62a   :  { %3637 = vmatpush2.bf16.msra.mxu1 %v4868_v60 }
 0x62b   :  { %3638 = vmatprep.subr.bf16.mxu1 %v4876_v62 }
 0x62e   :  { %3639 = vmatpush2.bf16.msra.mxu1 %v4874_v0 }
 0x62f   :  { %3640 = vmatprep.subr.bf16.mxu1 %v4882_v2 }
 0x632   :  { %3641 = vmatpush2.bf16.msra.mxu1 %v4880_v4 }
 0x6b5   :  { %v3152_v10 = vpop.f32.mrf.mxu1 }
 0x6b6   :  { %v3153_v11 = vadd.f32 %v3152_v10, %v3031_v8 }
 0x6b7   :  { %v3154_v12 = vpop.f32.mrf.mxu1 }
 0x6b8   :  { %v3155_v13 = vadd.f32 %v3154_v12, %v3035_v9  ;;  %v3159_v18 = vmax.f32 %v3153_v11, 0.0 }
 0x6b9   :  { %v3156_v19 = vpop.f32.mrf.mxu1 }
 0x6ba   :  { %v3160_v20 = vmax.f32 %v3155_v13, 0.0  ;;  %v3161_v23 = vpack.c.bf16 %v3159_v18, %v3159_v18 }
 0x6bb   :  { %v3157_v21 = vpop.f32.mrf.mxu1 }
 0x6bc   :  { %v3162_v22 = vpack.c.bf16 %v3160_v20, %v3160_v20 }
 0x6be   :  { %3601 = vmatprep.mubr.bf16.mxu0 %v3162_v22  ;;  %3642 = vmatprep.mubr.bf16.mxu1 %v3162_v22 }
 0x6bf   :  { %3602 = vmatmul.mubr.bf16.vlgmr.msra.gmra.mxu0 %v3161_v23  ;;  %3643 = vmatmul.mubr.bf16.vlgmr.msra.gmra.mxu1 %v3161_v23 }
 0x6c0   :  { %5096 = shalt.err (!%p5093_p12)
}
 0x6c1   :  { %3699 = dma.vmem_to_hbm [thread:$0]  %s3697_s13, 256, %s5439_s17, [#allocation22]   ;;  %v3227_v24 = vld [vmem:[%s5437_s15] sm:$0xf] }
 0x6c2   :  { %v3232_v25 = vrot.slane %v3227_v24, %v5356_v30  ;;  %v3240_v26 = vrot.slane %v3227_v24, %v2123_v14  ;;  %v3236_v28 = vrot.slane %v3227_v24, %v5364_v34  ;;  %v3244_v47 = vrot.slane %v3227_v24, %v2127_v15  ;;  %s5161_s15 = smov [#allocation20]  }
 0x6c3   :  { %s3686_s17 = sshll.u32 %s5161_s15, 4  ;;  %s3687_s17 = int_to_ptr.vmem [resolvable:$true] %s3686_s17 }
 0x6c4   :  { %s5105_s29 = scalar_lea.vmem %s3687_s17, 256  ;;  %p5110_p0 = scmp.lt.s32.totalorder %s3687_s17, %s3687_s17 }
 0x6c5   :  { %p5106_p13 = scmp.ne.s32.totalorder %s3687_s17, %s5105_s29  ;;  %p5111_p1 = scmp.lt.s32.totalorder %s5105_s29, %s5105_s29 }
 0x6c7   :  { %p5112_p2 = por %p5111_p1, %p5110_p0 }
 0x6c9   :  { %p5113_p3 = pnand %p5112_p2, %p5106_p13 }
 0x77f   :  { %v3603_v6 = vpop.f32.mrf.mxu0  ;;  %v3644_v7 = vpop.f32.mrf.mxu1 }
 0x780   :  { %v3604_v51 = vadd.f32 %v3603_v6, %v3232_v25  ;;  %v3645_v16 = vadd.f32 %v3644_v7, %v3240_v26 }
 0x781   :  { %v3605_v35 = vpop.f32.mrf.mxu0  ;;  %v3646_v17 = vpop.f32.mrf.mxu1 }
 0x782   :  { %v3606_v38 = vadd.f32 %v3605_v35, %v3236_v28  ;;  %v3647_v39 = vadd.f32 %v3646_v17, %v3244_v47  ;;  %v3651_v30 = vmax.f32 %v3604_v51, 0.0  ;;  %v3653_v37 = vmax.f32 %v3645_v16, 0.0 }
 0x783   :  { %v3607_v40 = vpop.f32.mrf.mxu0  ;;  %v3648_v36 = vpop.f32.mrf.mxu1 }
 0x784   :  { %v3652_v14 = vmax.f32 %v3606_v38, 0.0  ;;  %v3654_v41 = vmax.f32 %v3647_v39, 0.0 }
 0x785   :  { %v3608_v34 = vpop.f32.mrf.mxu0  ;;  %v3649_v42 = vpop.f32.mrf.mxu1 }
 0x786   :  { %v4156_v27 = vpack.c.bf16 %v3652_v14, %v3651_v30  ;;  %v4157_v15 = vpack.c.bf16 %v3654_v41, %v3653_v37 }
 0x788   :  { %3671 = vst [vmem:[#allocation20] sm:$0xff] %v4156_v27  ;;  %3672 = vst [vmem:[#allocation20 + $0x8] sm:$0xff] %v4157_v15 }
 0x789   :  { %5116 = shalt.err (!%p5113_p3)
}
 0x78a   :  { %3689 = dma.vmem_to_hbm [thread:$0]  %s3687_s17, 256, %s5438_s16, [#allocation5]  }
 0x78b   :  { %5137 = dma.done.wait [#allocation5], 256  }
 0x78c   :  { %5138 = vsyncadd [#allocation5], 4294967040 }
 0x78d   :  { %5139 = dma.done.wait [#allocation22], 256  }
 0x78e   :  { %5140 = vsyncadd [#allocation22], 4294967040 }
 0x78f   :  { %3706 = vsyncpa [#allocation4], 1 }
 0x790   :  { %3707 = vsyncpa [#allocation7], 1 }
 0x791   :  { %3708 = vsyncpa [#allocation10], 1 }
 0x792   :  { %3709 = vsyncpa [#allocation13], 1 }
 0x793   :  { %3710 = vsyncpa [#allocation16], 1 }
 0x794   :  { %3711 = vsyncpa [#allocation19], 1 }
 0x795   :  { %3712 = vsyncpa [#allocation5], 1 }
 0x796   :  { %3713 = vsyncpa [#allocation22], 1 }

</bundles_post_ra>
